<compile_context>
chip_gen: v5e
topology: v5e:2x2
jax: 0.10.0
libtpu: 0.0.40
codegen_flags: <defaults>
</compile_context>

<pallas_src>
import functools

import jax
import jax.numpy as jnp
from jax import lax
from jax.experimental import pallas as pl
from jax.experimental.pallas import tpu as pltpu

# ---- static hyper-parameters (match the reference defaults) -----------------
K_RADEMACHER = 2          # Rademacher directions used by hessian_penalty
EPSILON = 0.1             # finite-difference step of hessian_penalty
HESSIAN_WEIGHT = 0.01     # hessian_weight
HESSIAN_LAYERS = (-1, -2) # hessian_layers
CURRENT_LAYER = (-1,)     # current_layer
LEAKY_SLOPE = 0.2
LANE = 128


def _leaky_relu(x):
    return jnp.where(x > 0, x, LEAKY_SLOPE * x)


def _softplus(x):
    return jnp.maximum(x, 0.0) + jnp.log1p(jnp.exp(-jnp.abs(x)))


def _round_up(x, m):
    return ((x + m - 1) // m) * m


def _unbiased_var(samples):
    """torch.var semantics (unbiased, divisor K-1) across a list of K arrays."""
    k = len(samples)
    mean = samples[0]
    for s in samples[1:]:
        mean = mean + s
    mean = mean * (1.0 / k)
    var = jnp.zeros_like(mean)
    for s in samples:
        d = s - mean
        var = var + d * d
    return var * (1.0 / (k - 1))


def alae_generator_loss_kernel(
        alpha_ref, bd_ref,                 # SMEM scalars (1, 1)
        x_ref,                             # (T, d_tile) bf16
        v_ref,                             # (K, T, d_tile) bf16
        wf_ref,                            # (d_tile, HP+LP) bf16 : [w1 | ws]
        w2_ref,                            # (HP, LP) f32
        par_ref,                           # (8, PM) f32 : rows b1, bs, b2, wd
        out_ref,                           # (1, 1) f32
        px_acc, pv_acc,                    # VMEM (T, HP+LP), (K*T, HP) f32
        sum_sp, max_h1, max_z,             # VMEM (T,1), (T,HP), (T,LP) f32
        *, batch_tile, num_directions, total_batch, hid_pad, lat_pad):
    i = pl.program_id(0)                   # batch tile
    j = pl.program_id(1)                   # d_in tile (reduction, innermost)
    nt = pl.num_programs(0)
    nd = pl.num_programs(1)
    T = batch_tile
    HP = hid_pad
    LP = lat_pad

    @pl.when(jnp.logical_and(i == 0, j == 0))
    def _init_reductions():
        sum_sp[...] = jnp.zeros_like(sum_sp)
        max_h1[...] = jnp.zeros_like(max_h1)   # variance >= 0 -> zero init exact
        max_z[...] = jnp.zeros_like(max_z)

    @pl.when(j == 0)
    def _init_acc():
        px_acc[...] = jnp.zeros_like(px_acc)
        pv_acc[...] = jnp.zeros_like(pv_acc)

    # ---- the only D_IN-wide contractions, accumulated over d_in tiles --------
    wf = wf_ref[...]
    px_acc[...] += jnp.dot(x_ref[...], wf, preferred_element_type=jnp.float32)
    w1_t = wf[:, 0:HP]                     # skip columns are dead work for v_k
    for k in range(num_directions):
        r0, r1 = k * T, (k + 1) * T
        pv_acc[r0:r1, :] = pv_acc[r0:r1, :] + jnp.dot(
            v_ref[k], w1_t, preferred_element_type=jnp.float32)

    # ---- everything past the big matmul only on the last d_in step -----------
    @pl.when(j == nd - 1)
    def _post_matmul():
        alpha = alpha_ref[0, 0]
        bd = bd_ref[0, 0]
        b1 = par_ref[0:1, 0:HP]
        bs = par_ref[1:2, 0:LP]
        b2 = par_ref[2:3, 0:LP]
        wd = par_ref[3:4, 0:LP]
        w2 = w2_ref[...]

        px = px_acc[...]
        pre1_0 = px[:, 0:HP] + b1                          # layer -2 pre-act
        z_skip_0 = px[:, HP:HP + LP] + bs
        h1_0 = _leaky_relu(pre1_0)                         # layer -2
        z_deep_0 = jnp.dot(h1_0, w2, preferred_element_type=jnp.float32) + b2
        z_0 = alpha * z_deep_0 + (1.0 - alpha) * z_skip_0  # layer -1

        # loss = softplus(-D(E_z)).mean(); padded batch rows masked out.
        d = jnp.sum(z_0 * wd, axis=-1, keepdims=True) + bd
        sp = _softplus(-d)
        row = lax.broadcasted_iota(jnp.int32, (T, 1), 0) + i * T
        sp = jnp.where(row < total_batch, sp, 0.0)
        sum_sp[...] += sp

        # hessian penalty second-order finite differences.  The first layer is
        # linear in x: (x +/- eps v) @ w1 = pre1_0 +/- eps (v @ w1).  The skip
        # path is linear, so its SOD is exactly zero and the layer -1 SOD is
        # alpha * (deep-path SOD); biases cancel, so sod_z = alpha/eps^2 *
        # (sod_h1_raw @ w2).
        inv_eps2 = 1.0 / (EPSILON * EPSILON)
        sod_raw = []
        for k in range(num_directions):
            dv1 = pv_acc[k * T:(k + 1) * T, :]             # v_k @ w1
            h1_p = _leaky_relu(pre1_0 + EPSILON * dv1)
            h1_m = _leaky_relu(pre1_0 - EPSILON * dv1)
            sod_raw.append(h1_p - 2.0 * h1_0 + h1_m)

        if num_directions == 2:
            # unbiased var over 2 samples = 0.5 * (s0 - s1)^2, and the second
            # layer is linear -> a single tiny matmul of the raw-SOD difference.
            diff = sod_raw[0] - sod_raw[1]
            var_h1 = (0.5 * inv_eps2 * inv_eps2) * diff * diff
            dz = jnp.dot(diff, w2, preferred_element_type=jnp.float32)
            var_z = (0.5 * inv_eps2 * inv_eps2) * (alpha * alpha) * dz * dz
        else:
            sod_h1 = [s * inv_eps2 for s in sod_raw]
            sod_z = [alpha * inv_eps2 *
                     jnp.dot(s, w2, preferred_element_type=jnp.float32)
                     for s in sod_raw]
            var_h1 = _unbiased_var(sod_h1)
            var_z = _unbiased_var(sod_z)

        # elementwise running maxima (VPU); cross-lane collapse only at the end.
        max_h1[...] = jnp.maximum(max_h1[...], var_h1)
        max_z[...] = jnp.maximum(max_z[...], var_z)

        @pl.when(i == nt - 1)
        def _finalize():
            loss = jnp.sum(sum_sp[...], keepdims=True) * (1.0 / total_batch)
            for layer in HESSIAN_LAYERS:
                src = max_z if layer == -1 else max_h1
                h = jnp.max(src[...], keepdims=True) * HESSIAN_WEIGHT
                if layer in CURRENT_LAYER:
                    h = h * alpha
                loss = loss + h
            out_ref[...] = loss


def alae_generator_loss(fake_samples, alpha, params, rademacher):
    """fake_samples: (B, C, H, W) float32 (NCHW).  Returns scalar f32 loss."""
    B = fake_samples.shape[0]
    x = fake_samples.reshape(B, -1)                       # (B, D_IN), row-major
    d_in = x.shape[1]
    w1, b1, w2, b2, ws, bs, wd, bd = params
    hid = w1.shape[1]
    lat = w2.shape[1]
    k_dirs = rademacher.shape[0]

    # ---- lane padding for the hidden/latent widths ----------------------------
    HP = _round_up(hid, LANE)
    LP = _round_up(lat, LANE)
    PM = max(HP, LP)

    # ---- feature (d_in) tiling: bounds VMEM independently of image size -------
    d_round = _round_up(d_in, LANE)
    d_tile = min(d_round, 1024)
    d_pad = _round_up(d_in, d_tile)
    nd = d_pad // d_tile

    # ---- VMEM-budget-derived batch tile ---------------------------------------
    try:
        vmem_cap = int(pltpu.get_tpu_info().vmem_capacity_bytes)
    except Exception:
        vmem_cap = 64 * 1024 * 1024                        # v7x per-core VMEM
    vmem_limit = min(vmem_cap * 3 // 4, 100 * 1024 * 1024)

    def _vmem_bytes(t):
        dbl = 2  # double-buffered pipeline blocks
        blocks = (t * d_tile * 2 + k_dirs * t * d_tile * 2          # x, v (bf16)
                  + d_tile * (HP + LP) * 2                          # wf (bf16)
                  + HP * LP * 4 + 8 * PM * 4) * dbl                 # w2, params
        scratch = (t * (HP + LP) * 4 + k_dirs * t * HP * 4
                   + t * LANE * 4 + t * HP * 4 + t * LP * 4)
        return blocks + scratch

    b_tile = 8
    for cand in (512, 256, 128, 64, 32, 16, 8):
        if _vmem_bytes(cand) <= int(vmem_limit * 0.75):
            b_tile = cand
            break
    b_tile = min(b_tile, _round_up(B, 8))                  # never over-tile tiny B
    b_pad = _round_up(B, b_tile)
    nt = b_pad // b_tile

    # ---- parameter / input layout plumbing (zero padding only, no compute) ----
    def _pad(a, shape, dtype):
        a = a.astype(dtype)
        if a.shape == shape:
            return a
        return jnp.pad(a, [(0, s - d) for d, s in zip(a.shape, shape)])

    # D_IN-wide operands in bf16 (halves HBM bytes; +/-1 Rademacher is exact).
    # All second-order-difference arithmetic stays f32 inside the kernel.
    x_p = _pad(x, (b_pad, d_pad), jnp.bfloat16)
    v_p = _pad(rademacher, (k_dirs, b_pad, d_pad), jnp.bfloat16)
    wf = jnp.concatenate(
        [_pad(w1, (d_pad, HP), jnp.float32),
         _pad(ws, (d_pad, LP), jnp.float32)], axis=1).astype(jnp.bfloat16)
    w2_p = _pad(w2, (HP, LP), jnp.float32)

    par = jnp.zeros((8, PM), jnp.float32)                  # fused tiny params
    par = par.at[0, :hid].set(jnp.reshape(b1, (-1,)).astype(jnp.float32))
    par = par.at[1, :lat].set(jnp.reshape(bs, (-1,)).astype(jnp.float32))
    par = par.at[2, :lat].set(jnp.reshape(b2, (-1,)).astype(jnp.float32))
    par = par.at[3, :lat].set(jnp.reshape(wd, (-1,)).astype(jnp.float32))

    alpha_s = jnp.full((1, 1), alpha, jnp.float32)
    bd_s = jnp.reshape(bd, (1, 1)).astype(jnp.float32)

    smem = pltpu.MemorySpace.SMEM
    kernel = functools.partial(
        alae_generator_loss_kernel,
        batch_tile=b_tile, num_directions=k_dirs, total_batch=B,
        hid_pad=HP, lat_pad=LP)

    grid_spec = pltpu.PrefetchScalarGridSpec(
        num_scalar_prefetch=0,
        grid=(nt, nd),                                     # reduction axis last
        in_specs=[
            pl.BlockSpec((1, 1), lambda i, j: (0, 0), memory_space=smem),  # alpha
            pl.BlockSpec((1, 1), lambda i, j: (0, 0), memory_space=smem),  # bd
            pl.BlockSpec((b_tile, d_tile), lambda i, j: (i, j)),           # x
            pl.BlockSpec((k_dirs, b_tile, d_tile), lambda i, j: (0, i, j)),# v
            pl.BlockSpec((d_tile, HP + LP), lambda i, j: (j, 0)),          # [w1|ws]
            pl.BlockSpec((HP, LP), lambda i, j: (0, 0)),                   # w2
            pl.BlockSpec((8, PM), lambda i, j: (0, 0)),                    # b1/bs/b2/wd
        ],
        out_specs=pl.BlockSpec((1, 1), lambda i, j: (0, 0)),
        scratch_shapes=[
            pltpu.VMEM((b_tile, HP + LP), jnp.float32),        # px accumulator
            pltpu.VMEM((k_dirs * b_tile, HP), jnp.float32),    # v@w1 accumulator
            pltpu.VMEM((b_tile, 1), jnp.float32),              # softplus running sum
            pltpu.VMEM((b_tile, HP), jnp.float32),             # running max var (-2)
            pltpu.VMEM((b_tile, LP), jnp.float32),             # running max var (-1)
        ],
    )

    out = pl.pallas_call(
        kernel,
        out_shape=jax.ShapeDtypeStruct((1, 1), jnp.float32),
        grid_spec=grid_spec,
        compiler_params=pltpu.CompilerParams(
            # Both grid axes accumulate into shared scratch, so both stay
            # "arbitrary" (per-core partials would be needed to split the batch
            # axis across v7x's two TensorCores).
            dimension_semantics=("arbitrary", "arbitrary"),
            vmem_limit_bytes=int(vmem_limit)),
    )(alpha_s, bd_s, x_p, v_p, wf, w2_p, par)
    return out[0, 0]


if __name__ == "__main__":
    key = jax.random.PRNGKey(0)
    B, C, H_IMG, W_IMG = 2, 4, 16, 16
    HID, LAT = 32, 32
    D_IN = C * H_IMG * W_IMG

    ks = jax.random.split(key, 8)
    fake_samples = jax.random.normal(ks[0], (B, C, H_IMG, W_IMG), jnp.float32)

    # deterministic synthetic parameters for E and D
    w1 = 0.05 * jax.random.normal(ks[1], (D_IN, HID), jnp.float32)
    b1 = jnp.zeros((1, HID), jnp.float32)
    w2 = 0.10 * jax.random.normal(ks[2], (HID, LAT), jnp.float32)
    b2 = jnp.zeros((1, LAT), jnp.float32)
    ws = 0.05 * jax.random.normal(ks[3], (D_IN, LAT), jnp.float32)
    bs = jnp.zeros((1, LAT), jnp.float32)
    wd = 0.10 * jax.random.normal(ks[4], (1, LAT), jnp.float32)
    bd = jnp.zeros((), jnp.float32)
    params = (w1, b1, w2, b2, ws, bs, wd, bd)

    # deterministic Rademacher directions for the hessian penalty
    rademacher = jnp.where(
        jax.random.bernoulli(ks[5], 0.5, (K_RADEMACHER, B, D_IN)),
        1.0, -1.0).astype(jnp.float32)

    alpha = 0.7
    loss = alae_generator_loss(fake_samples, alpha, params, rademacher)
    jax.block_until_ready(loss)
    print("KERNEL_OK")
</pallas_src>

<mosaic_0001>
module attributes {stable_mosaic.version = 11 : i64} {
  func.func @alae_generator_loss_kernel(%arg0: i32, %arg1: i32, %arg2: memref<1x1xf32, #tpu.memory_space<smem>>, %arg3: memref<1x1xf32, #tpu.memory_space<smem>>, %arg4: memref<8x1024xbf16, #tpu.memory_space<vmem>>, %arg5: memref<2x8x1024xbf16, #tpu.memory_space<vmem>>, %arg6: memref<1024x256xbf16, #tpu.memory_space<vmem>>, %arg7: memref<128x128xf32, #tpu.memory_space<vmem>>, %arg8: memref<8x128xf32, #tpu.memory_space<vmem>>, %arg9: memref<1x1xf32, #tpu.memory_space<vmem>>, %arg10: memref<8x256xf32, #tpu.memory_space<vmem>>, %arg11: memref<16x128xf32, #tpu.memory_space<vmem>>, %arg12: memref<8x1xf32, #tpu.memory_space<vmem>>, %arg13: memref<8x128xf32, #tpu.memory_space<vmem>>, %arg14: memref<8x128xf32, #tpu.memory_space<vmem>>) attributes {dimension_semantics = [#tpu.dimension_semantics<arbitrary>, #tpu.dimension_semantics<arbitrary>], iteration_bounds = array<i64: 1, 1>, scalar_prefetch = 0 : i64, scratch_operands = 5 : i64, tpu.core_type = #tpu.core_type<tc>, window_params = [{transform_indices = @transform_0, window_bounds = array<i64: 1, 1>}, {transform_indices = @transform_1, window_bounds = array<i64: 1, 1>}, {transform_indices = @transform_2, window_bounds = array<i64: 8, 1024>}, {transform_indices = @transform_3, window_bounds = array<i64: 2, 8, 1024>}, {transform_indices = @transform_4, window_bounds = array<i64: 1024, 256>}, {pipeline_mode = #tpu.pipeline_mode<synchronous>, transform_indices = @transform_5, window_bounds = array<i64: 128, 128>}, {pipeline_mode = #tpu.pipeline_mode<synchronous>, transform_indices = @transform_6, window_bounds = array<i64: 8, 128>}, {pipeline_mode = #tpu.pipeline_mode<synchronous>, transform_indices = @transform_7, window_bounds = array<i64: 1, 1>}]} {
    %c0_i32 = arith.constant 0 : i32
    %0 = arith.cmpi eq, %arg0, %c0_i32 : i32
    %c0_i32_0 = arith.constant 0 : i32
    %1 = arith.cmpi eq, %arg1, %c0_i32_0 : i32
    %2 = arith.andi %0, %1 : i1
    %3 = arith.extui %2 : i1 to i32
    %c0_i32_1 = arith.constant 0 : i32
    %4 = arith.cmpi ne, %3, %c0_i32_1 : i32
    scf.if %4 {
      %cst_27 = arith.constant 0.000000e+00 : f32
      %30 = vector.broadcast %cst_27 : f32 to vector<8x1xf32>
      %c0_28 = arith.constant 0 : index
      %c0_29 = arith.constant 0 : index
      %31 = vector.load %arg12[%c0_28, %c0_29] : memref<8x1xf32, #tpu.memory_space<vmem>>, vector<8x1xf32>
      tpu.vector_store %arg12[%c0_28, %c0_29], %30 {strides = array<i32>} : memref<8x1xf32, #tpu.memory_space<vmem>>, vector<8x1xf32>,
      %cst_30 = arith.constant 0.000000e+00 : f32
      %32 = vector.broadcast %cst_30 : f32 to vector<8x128xf32>
      %c0_31 = arith.constant 0 : index
      %c0_32 = arith.constant 0 : index
      %33 = vector.load %arg13[%c0_31, %c0_32] : memref<8x128xf32, #tpu.memory_space<vmem>>, vector<8x128xf32>
      tpu.vector_store %arg13[%c0_31, %c0_32], %32 {strides = array<i32>} : memref<8x128xf32, #tpu.memory_space<vmem>>, vector<8x128xf32>,
      %cst_33 = arith.constant 0.000000e+00 : f32
      %34 = vector.broadcast %cst_33 : f32 to vector<8x128xf32>
      %c0_34 = arith.constant 0 : index
      %c0_35 = arith.constant 0 : index
      %35 = vector.load %arg14[%c0_34, %c0_35] : memref<8x128xf32, #tpu.memory_space<vmem>>, vector<8x128xf32>
      tpu.vector_store %arg14[%c0_34, %c0_35], %34 {strides = array<i32>} : memref<8x128xf32, #tpu.memory_space<vmem>>, vector<8x128xf32>,
    } else {
    }
    %c0_i32_2 = arith.constant 0 : i32
    %5 = arith.cmpi eq, %arg1, %c0_i32_2 : i32
    %6 = arith.extui %5 : i1 to i32
    %c0_i32_3 = arith.constant 0 : i32
    %7 = arith.cmpi ne, %6, %c0_i32_3 : i32
    scf.if %7 {
      %cst_27 = arith.constant 0.000000e+00 : f32
      %30 = vector.broadcast %cst_27 : f32 to vector<8x256xf32>
      %c0_28 = arith.constant 0 : index
      %c0_29 = arith.constant 0 : index
      %31 = vector.load %arg10[%c0_28, %c0_29] : memref<8x256xf32, #tpu.memory_space<vmem>>, vector<8x256xf32>
      tpu.vector_store %arg10[%c0_28, %c0_29], %30 {strides = array<i32>} : memref<8x256xf32, #tpu.memory_space<vmem>>, vector<8x256xf32>,
      %cst_30 = arith.constant 0.000000e+00 : f32
      %32 = vector.broadcast %cst_30 : f32 to vector<16x128xf32>
      %c0_31 = arith.constant 0 : index
      %c0_32 = arith.constant 0 : index
      %33 = vector.load %arg11[%c0_31, %c0_32] : memref<16x128xf32, #tpu.memory_space<vmem>>, vector<16x128xf32>
      tpu.vector_store %arg11[%c0_31, %c0_32], %32 {strides = array<i32>} : memref<16x128xf32, #tpu.memory_space<vmem>>, vector<16x128xf32>,
    } else {
    }
    %c0 = arith.constant 0 : index
    %c0_4 = arith.constant 0 : index
    %8 = vector.load %arg6[%c0, %c0_4] : memref<1024x256xbf16, #tpu.memory_space<vmem>>, vector<1024x256xbf16>
    %c0_5 = arith.constant 0 : index
    %c0_6 = arith.constant 0 : index
    %9 = vector.load %arg10[%c0_5, %c0_6] : memref<8x256xf32, #tpu.memory_space<vmem>>, vector<8x256xf32>
    %c0_7 = arith.constant 0 : index
    %c0_8 = arith.constant 0 : index
    %10 = vector.load %arg4[%c0_7, %c0_8] : memref<8x1024xbf16, #tpu.memory_space<vmem>>, vector<8x1024xbf16>
    %cst = arith.constant dense<0.000000e+00> : vector<8x256xf32>
    %11 = tpu.matmul %10, %8, %cst {dimension_numbers = #tpu.dot_dimension_numbers<[1], [0], [0], [1], [0, 0, 1, 1], [], []>} : vector<8x1024xbf16>, vector<1024x256xbf16>, vector<8x256xf32> -> vector<8x256xf32>
    %12 = arith.addf %9, %11 : vector<8x256xf32>
    %c0_9 = arith.constant 0 : index
    %c0_10 = arith.constant 0 : index
    %13 = vector.load %arg10[%c0_9, %c0_10] : memref<8x256xf32, #tpu.memory_space<vmem>>, vector<8x256xf32>
    tpu.vector_store %arg10[%c0_9, %c0_10], %12 {strides = array<i32>} : memref<8x256xf32, #tpu.memory_space<vmem>>, vector<8x256xf32>,
    %14 = vector.extract_strided_slice %8 {offsets = [0, 0], sizes = [1024, 128], strides = [1, 1]} : vector<1024x256xbf16> to vector<1024x128xbf16>
    %c0_11 = arith.constant 0 : index
    %c0_12 = arith.constant 0 : index
    %15 = vector.load %arg11[%c0_11, %c0_12] : memref<16x128xf32, #tpu.memory_space<vmem>>, vector<8x128xf32>
    %c0_13 = arith.constant 0 : index
    %c0_14 = arith.constant 0 : index
    %c0_15 = arith.constant 0 : index
    %16 = vector.load %arg5[%c0_13, %c0_14, %c0_15] : memref<2x8x1024xbf16, #tpu.memory_space<vmem>>, vector<1x8x1024xbf16>
    %17 = vector.shape_cast %16 : vector<1x8x1024xbf16> to vector<8x1024xbf16>
    %cst_16 = arith.constant dense<0.000000e+00> : vector<8x128xf32>
    %18 = tpu.matmul %17, %14, %cst_16 {dimension_numbers = #tpu.dot_dimension_numbers<[1], [0], [0], [1], [0, 0, 1, 1], [], []>} : vector<8x1024xbf16>, vector<1024x128xbf16>, vector<8x128xf32> -> vector<8x128xf32>
    %19 = arith.addf %15, %18 : vector<8x128xf32>
    %c0_17 = arith.constant 0 : index
    %c0_18 = arith.constant 0 : index
    %20 = vector.load %arg11[%c0_17, %c0_18] : memref<16x128xf32, #tpu.memory_space<vmem>>, vector<8x128xf32>
    tpu.vector_store %arg11[%c0_17, %c0_18], %19 {strides = array<i32>} : memref<16x128xf32, #tpu.memory_space<vmem>>, vector<8x128xf32>,
    %c8 = arith.constant 8 : index
    %c0_19 = arith.constant 0 : index
    %21 = vector.load %arg11[%c8, %c0_19] : memref<16x128xf32, #tpu.memory_space<vmem>>, vector<8x128xf32>
    %c1 = arith.constant 1 : index
    %c0_20 = arith.constant 0 : index
    %c0_21 = arith.constant 0 : index
    %22 = vector.load %arg5[%c1, %c0_20, %c0_21] : memref<2x8x1024xbf16, #tpu.memory_space<vmem>>, vector<1x8x1024xbf16>
    %23 = vector.shape_cast %22 : vector<1x8x1024xbf16> to vector<8x1024xbf16>
    %cst_22 = arith.constant dense<0.000000e+00> : vector<8x128xf32>
    %24 = tpu.matmul %23, %14, %cst_22 {dimension_numbers = #tpu.dot_dimension_numbers<[1], [0], [0], [1], [0, 0, 1, 1], [], []>} : vector<8x1024xbf16>, vector<1024x128xbf16>, vector<8x128xf32> -> vector<8x128xf32>
    %25 = arith.addf %21, %24 : vector<8x128xf32>
    %c8_23 = arith.constant 8 : index
    %c0_24 = arith.constant 0 : index
    %26 = vector.load %arg11[%c8_23, %c0_24] : memref<16x128xf32, #tpu.memory_space<vmem>>, vector<8x128xf32>
    tpu.vector_store %arg11[%c8_23, %c0_24], %25 {strides = array<i32>} : memref<16x128xf32, #tpu.memory_space<vmem>>, vector<8x128xf32>,
    %c0_i32_25 = arith.constant 0 : i32
    %27 = arith.cmpi eq, %arg1, %c0_i32_25 : i32
    %28 = arith.extui %27 : i1 to i32
    %c0_i32_26 = arith.constant 0 : i32
    %29 = arith.cmpi ne, %28, %c0_i32_26 : i32
    scf.if %29 {
      %c0_27 = arith.constant 0 : index
      %c0_28 = arith.constant 0 : index
      %30 = memref.load %arg2[%c0_27, %c0_28] : memref<1x1xf32, #tpu.memory_space<smem>>
      %c0_29 = arith.constant 0 : index
      %c0_30 = arith.constant 0 : index
      %31 = memref.load %arg3[%c0_29, %c0_30] : memref<1x1xf32, #tpu.memory_space<smem>>
      %c0_31 = arith.constant 0 : index
      %c0_32 = arith.constant 0 : index
      %32 = vector.load %arg8[%c0_31, %c0_32] : memref<8x128xf32, #tpu.memory_space<vmem>>, vector<1x128xf32>
      %c1_33 = arith.constant 1 : index
      %c0_34 = arith.constant 0 : index
      %33 = vector.load %arg8[%c1_33, %c0_34] : memref<8x128xf32, #tpu.memory_space<vmem>>, vector<1x128xf32>
      %c2 = arith.constant 2 : index
      %c0_35 = arith.constant 0 : index
      %34 = vector.load %arg8[%c2, %c0_35] : memref<8x128xf32, #tpu.memory_space<vmem>>, vector<1x128xf32>
      %c3 = arith.constant 3 : index
      %c0_36 = arith.constant 0 : index
      %35 = vector.load %arg8[%c3, %c0_36] : memref<8x128xf32, #tpu.memory_space<vmem>>, vector<1x128xf32>
      %c0_37 = arith.constant 0 : index
      %c0_38 = arith.constant 0 : index
      %36 = vector.load %arg7[%c0_37, %c0_38] : memref<128x128xf32, #tpu.memory_space<vmem>>, vector<128x128xf32>
      %c0_39 = arith.constant 0 : index
      %c0_40 = arith.constant 0 : index
      %37 = vector.load %arg10[%c0_39, %c0_40] : memref<8x256xf32, #tpu.memory_space<vmem>>, vector<8x256xf32>
      %38 = vector.extract_strided_slice %37 {offsets = [0, 0], sizes = [8, 128], strides = [1, 1]} : vector<8x256xf32> to vector<8x128xf32>
      %39 = vector.broadcast %32 : vector<1x128xf32> to vector<8x128xf32>
      %40 = arith.addf %38, %39 : vector<8x128xf32>
      %41 = vector.extract_strided_slice %37 {offsets = [0, 128], sizes = [8, 128], strides = [1, 1]} : vector<8x256xf32> to vector<8x128xf32>
      %42 = vector.broadcast %33 : vector<1x128xf32> to vector<8x128xf32>
      %43 = arith.addf %41, %42 : vector<8x128xf32>
      %cst_41 = arith.constant 0.000000e+00 : f32
      %44 = vector.broadcast %cst_41 : f32 to vector<8x128xf32>
      %45 = arith.cmpf ogt, %40, %44 : vector<8x128xf32>
      %cst_42 = arith.constant 2.000000e-01 : f32
      %46 = vector.broadcast %cst_42 : f32 to vector<8x128xf32>
      %47 = arith.mulf %46, %40 : vector<8x128xf32>
      %48 = arith.select %45, %40, %47 : vector<8x128xi1>, vector<8x128xf32>
      %cst_43 = arith.constant dense<0.000000e+00> : vector<8x128xf32>
      %49 = tpu.matmul %48, %36, %cst_43 {dimension_numbers = #tpu.dot_dimension_numbers<[1], [0], [0], [1], [0, 0, 1, 1], [], []>} : vector<8x128xf32>, vector<128x128xf32>, vector<8x128xf32> -> vector<8x128xf32>
      %50 = vector.broadcast %34 : vector<1x128xf32> to vector<8x128xf32>
      %51 = arith.addf %49, %50 : vector<8x128xf32>
      %52 = vector.broadcast %30 : f32 to vector<8x128xf32>
      %53 = arith.mulf %52, %51 : vector<8x128xf32>
      %cst_44 = arith.constant 1.000000e+00 : f32
      %54 = arith.subf %cst_44, %30 : f32
      %55 = vector.broadcast %54 : f32 to vector<8x128xf32>
      %56 = arith.mulf %55, %43 : vector<8x128xf32>
      %57 = arith.addf %53, %56 : vector<8x128xf32>
      %58 = vector.broadcast %35 : vector<1x128xf32> to vector<8x128xf32>
      %59 = arith.mulf %57, %58 : vector<8x128xf32>
      %cst_45 = arith.constant dense<0.000000e+00> : vector<8xf32>
      %60 = vector.multi_reduction <add>, %59, %cst_45 [1] : vector<8x128xf32> to vector<8xf32>
      %61 = vector.shape_cast %60 : vector<8xf32> to vector<8x1xf32>
      %62 = vector.broadcast %31 : f32 to vector<8x1xf32>
      %63 = arith.addf %61, %62 : vector<8x1xf32>
      %cst_46 = arith.constant 0.000000e+00 : f32
      %64 = vector.broadcast %cst_46 : f32 to vector<8x1xf32>
      %65 = arith.subf %64, %63 : vector<8x1xf32>
      %cst_47 = arith.constant 0.000000e+00 : f32
      %66 = vector.broadcast %cst_47 : f32 to vector<8x1xf32>
      %67 = arith.maximumf %65, %66 : vector<8x1xf32>
      %68 = math.absf %65 : vector<8x1xf32>
      %cst_48 = arith.constant 0.000000e+00 : f32
      %69 = vector.broadcast %cst_48 : f32 to vector<8x1xf32>
      %70 = arith.subf %69, %68 : vector<8x1xf32>
      %71 = math.exp %70 : vector<8x1xf32>
      %72 = math.log1p %71 : vector<8x1xf32>
      %73 = arith.addf %67, %72 : vector<8x1xf32>
      %74 = tpu.iota {dimensions = array<i32: 0>} : vector<8x1xi32>
      %c8_i32 = arith.constant 8 : i32
      %75 = arith.muli %arg0, %c8_i32 : i32
      %76 = vector.broadcast %75 : i32 to vector<8x1xi32>
      %77 = arith.addi %74, %76 : vector<8x1xi32>
      %c2_i32 = arith.constant 2 : i32
      %78 = vector.broadcast %c2_i32 : i32 to vector<8x1xi32>
      %79 = arith.cmpi slt, %77, %78 : vector<8x1xi32>
      %cst_49 = arith.constant 0.000000e+00 : f32
      %80 = vector.broadcast %cst_49 : f32 to vector<8x1xf32>
      %81 = arith.select %79, %73, %80 : vector<8x1xi1>, vector<8x1xf32>
      %c0_50 = arith.constant 0 : index
      %c0_51 = arith.constant 0 : index
      %82 = vector.load %arg12[%c0_50, %c0_51] : memref<8x1xf32, #tpu.memory_space<vmem>>, vector<8x1xf32>
      %83 = arith.addf %82, %81 : vector<8x1xf32>
      %c0_52 = arith.constant 0 : index
      %c0_53 = arith.constant 0 : index
      %84 = vector.load %arg12[%c0_52, %c0_53] : memref<8x1xf32, #tpu.memory_space<vmem>>, vector<8x1xf32>
      tpu.vector_store %arg12[%c0_52, %c0_53], %83 {strides = array<i32>} : memref<8x1xf32, #tpu.memory_space<vmem>>, vector<8x1xf32>,
      %c0_54 = arith.constant 0 : index
      %c0_55 = arith.constant 0 : index
      %85 = vector.load %arg11[%c0_54, %c0_55] : memref<16x128xf32, #tpu.memory_space<vmem>>, vector<8x128xf32>
      %cst_56 = arith.constant 1.000000e-01 : f32
      %86 = vector.broadcast %cst_56 : f32 to vector<8x128xf32>
      %87 = arith.mulf %86, %85 : vector<8x128xf32>
      %88 = arith.addf %40, %87 : vector<8x128xf32>
      %cst_57 = arith.constant 0.000000e+00 : f32
      %89 = vector.broadcast %cst_57 : f32 to vector<8x128xf32>
      %90 = arith.cmpf ogt, %88, %89 : vector<8x128xf32>
      %cst_58 = arith.constant 2.000000e-01 : f32
      %91 = vector.broadcast %cst_58 : f32 to vector<8x128xf32>
      %92 = arith.mulf %91, %88 : vector<8x128xf32>
      %93 = arith.select %90, %88, %92 : vector<8x128xi1>, vector<8x128xf32>
      %cst_59 = arith.constant 1.000000e-01 : f32
      %94 = vector.broadcast %cst_59 : f32 to vector<8x128xf32>
      %95 = arith.mulf %94, %85 : vector<8x128xf32>
      %96 = arith.subf %40, %95 : vector<8x128xf32>
      %cst_60 = arith.constant 0.000000e+00 : f32
      %97 = vector.broadcast %cst_60 : f32 to vector<8x128xf32>
      %98 = arith.cmpf ogt, %96, %97 : vector<8x128xf32>
      %cst_61 = arith.constant 2.000000e-01 : f32
      %99 = vector.broadcast %cst_61 : f32 to vector<8x128xf32>
      %100 = arith.mulf %99, %96 : vector<8x128xf32>
      %101 = arith.select %98, %96, %100 : vector<8x128xi1>, vector<8x128xf32>
      %cst_62 = arith.constant 2.000000e+00 : f32
      %102 = vector.broadcast %cst_62 : f32 to vector<8x128xf32>
      %103 = arith.mulf %102, %48 : vector<8x128xf32>
      %104 = arith.subf %93, %103 : vector<8x128xf32>
      %105 = arith.addf %104, %101 : vector<8x128xf32>
      %c8_63 = arith.constant 8 : index
      %c0_64 = arith.constant 0 : index
      %106 = vector.load %arg11[%c8_63, %c0_64] : memref<16x128xf32, #tpu.memory_space<vmem>>, vector<8x128xf32>
      %cst_65 = arith.constant 1.000000e-01 : f32
      %107 = vector.broadcast %cst_65 : f32 to vector<8x128xf32>
      %108 = arith.mulf %107, %106 : vector<8x128xf32>
      %109 = arith.addf %40, %108 : vector<8x128xf32>
      %cst_66 = arith.constant 0.000000e+00 : f32
      %110 = vector.broadcast %cst_66 : f32 to vector<8x128xf32>
      %111 = arith.cmpf ogt, %109, %110 : vector<8x128xf32>
      %cst_67 = arith.constant 2.000000e-01 : f32
      %112 = vector.broadcast %cst_67 : f32 to vector<8x128xf32>
      %113 = arith.mulf %112, %109 : vector<8x128xf32>
      %114 = arith.select %111, %109, %113 : vector<8x128xi1>, vector<8x128xf32>
      %cst_68 = arith.constant 1.000000e-01 : f32
      %115 = vector.broadcast %cst_68 : f32 to vector<8x128xf32>
      %116 = arith.mulf %115, %106 : vector<8x128xf32>
      %117 = arith.subf %40, %116 : vector<8x128xf32>
      %cst_69 = arith.constant 0.000000e+00 : f32
      %118 = vector.broadcast %cst_69 : f32 to vector<8x128xf32>
      %119 = arith.cmpf ogt, %117, %118 : vector<8x128xf32>
      %cst_70 = arith.constant 2.000000e-01 : f32
      %120 = vector.broadcast %cst_70 : f32 to vector<8x128xf32>
      %121 = arith.mulf %120, %117 : vector<8x128xf32>
      %122 = arith.select %119, %117, %121 : vector<8x128xi1>, vector<8x128xf32>
      %cst_71 = arith.constant 2.000000e+00 : f32
      %123 = vector.broadcast %cst_71 : f32 to vector<8x128xf32>
      %124 = arith.mulf %123, %48 : vector<8x128xf32>
      %125 = arith.subf %114, %124 : vector<8x128xf32>
      %126 = arith.addf %125, %122 : vector<8x128xf32>
      %127 = arith.subf %105, %126 : vector<8x128xf32>
      %cst_72 = arith.constant 5.000000e+03 : f32
      %128 = vector.broadcast %cst_72 : f32 to vector<8x128xf32>
      %129 = arith.mulf %128, %127 : vector<8x128xf32>
      %130 = arith.mulf %129, %127 : vector<8x128xf32>
      %cst_73 = arith.constant dense<0.000000e+00> : vector<8x128xf32>
      %131 = tpu.matmul %127, %36, %cst_73 {dimension_numbers = #tpu.dot_dimension_numbers<[1], [0], [0], [1], [0, 0, 1, 1], [], []>} : vector<8x128xf32>, vector<128x128xf32>, vector<8x128xf32> -> vector<8x128xf32>
      %132 = arith.mulf %30, %30 : f32
      %cst_74 = arith.constant 5.000000e+03 : f32
      %133 = arith.mulf %cst_74, %132 : f32
      %134 = vector.broadcast %133 : f32 to vector<8x128xf32>
      %135 = arith.mulf %134, %131 : vector<8x128xf32>
      %136 = arith.mulf %135, %131 : vector<8x128xf32>
      %c0_75 = arith.constant 0 : index
      %c0_76 = arith.constant 0 : index
      %137 = vector.load %arg13[%c0_75, %c0_76] : memref<8x128xf32, #tpu.memory_space<vmem>>, vector<8x128xf32>
      %138 = arith.maximumf %137, %130 : vector<8x128xf32>
      %c0_77 = arith.constant 0 : index
      %c0_78 = arith.constant 0 : index
      %139 = vector.load %arg13[%c0_77, %c0_78] : memref<8x128xf32, #tpu.memory_space<vmem>>, vector<8x128xf32>
      tpu.vector_store %arg13[%c0_77, %c0_78], %138 {strides = array<i32>} : memref<8x128xf32, #tpu.memory_space<vmem>>, vector<8x128xf32>,
      %c0_79 = arith.constant 0 : index
      %c0_80 = arith.constant 0 : index
      %140 = vector.load %arg14[%c0_79, %c0_80] : memref<8x128xf32, #tpu.memory_space<vmem>>, vector<8x128xf32>
      %141 = arith.maximumf %140, %136 : vector<8x128xf32>
      %c0_81 = arith.constant 0 : index
      %c0_82 = arith.constant 0 : index
      %142 = vector.load %arg14[%c0_81, %c0_82] : memref<8x128xf32, #tpu.memory_space<vmem>>, vector<8x128xf32>
      tpu.vector_store %arg14[%c0_81, %c0_82], %141 {strides = array<i32>} : memref<8x128xf32, #tpu.memory_space<vmem>>, vector<8x128xf32>,
      %c0_i32_83 = arith.constant 0 : i32
      %143 = arith.cmpi eq, %arg0, %c0_i32_83 : i32
      %144 = arith.extui %143 : i1 to i32
      %c0_i32_84 = arith.constant 0 : i32
      %145 = arith.cmpi ne, %144, %c0_i32_84 : i32
      scf.if %145 {
        %c0_85 = arith.constant 0 : index
        %c0_86 = arith.constant 0 : index
        %146 = vector.load %arg12[%c0_85, %c0_86] : memref<8x1xf32, #tpu.memory_space<vmem>>, vector<8x1xf32>
        %147 = vector.shape_cast %146 : vector<8x1xf32> to vector<1x8x1xf32>
        %cst_87 = arith.constant dense<0.000000e+00> : vector<1xf32>
        %148 = vector.multi_reduction <add>, %147, %cst_87 [1, 2] : vector<1x8x1xf32> to vector<1xf32>
        %149 = vector.shape_cast %148 : vector<1xf32> to vector<1x1x1xf32>
        %150 = vector.extract %149[0, 0, 0] : f32 from vector<1x1x1xf32>
        %151 = vector.broadcast %150 : f32 to vector<1x1xf32>
        %cst_88 = arith.constant 5.000000e-01 : f32
        %152 = vector.broadcast %cst_88 : f32 to vector<1x1xf32>
        %153 = arith.mulf %151, %152 : vector<1x1xf32>
        %c0_89 = arith.constant 0 : index
        %c0_90 = arith.constant 0 : index
        %154 = vector.load %arg14[%c0_89, %c0_90] : memref<8x128xf32, #tpu.memory_space<vmem>>, vector<8x128xf32>
        %155 = vector.shape_cast %154 : vector<8x128xf32> to vector<1x8x128xf32>
        %cst_91 = arith.constant dense<0xFF800000> : vector<1xf32>
        %156 = vector.multi_reduction <maximumf>, %155, %cst_91 [1, 2] : vector<1x8x128xf32> to vector<1xf32>
        %157 = vector.shape_cast %156 : vector<1xf32> to vector<1x1x1xf32>
        %158 = vector.extract %157[0, 0, 0] : f32 from vector<1x1x1xf32>
        %159 = vector.broadcast %158 : f32 to vector<1x1xf32>
        %cst_92 = arith.constant 0.00999999977 : f32
        %160 = vector.broadcast %cst_92 : f32 to vector<1x1xf32>
        %161 = arith.mulf %159, %160 : vector<1x1xf32>
        %162 = vector.broadcast %30 : f32 to vector<1x1xf32>
        %163 = arith.mulf %161, %162 : vector<1x1xf32>
        %164 = arith.addf %153, %163 : vector<1x1xf32>
        %c0_93 = arith.constant 0 : index
        %c0_94 = arith.constant 0 : index
        %165 = vector.load %arg13[%c0_93, %c0_94] : memref<8x128xf32, #tpu.memory_space<vmem>>, vector<8x128xf32>
        %166 = vector.shape_cast %165 : vector<8x128xf32> to vector<1x8x128xf32>
        %cst_95 = arith.constant dense<0xFF800000> : vector<1xf32>
        %167 = vector.multi_reduction <maximumf>, %166, %cst_95 [1, 2] : vector<1x8x128xf32> to vector<1xf32>
        %168 = vector.shape_cast %167 : vector<1xf32> to vector<1x1x1xf32>
        %169 = vector.extract %168[0, 0, 0] : f32 from vector<1x1x1xf32>
        %170 = vector.broadcast %169 : f32 to vector<1x1xf32>
        %cst_96 = arith.constant 0.00999999977 : f32
        %171 = vector.broadcast %cst_96 : f32 to vector<1x1xf32>
        %172 = arith.mulf %170, %171 : vector<1x1xf32>
        %173 = arith.addf %164, %172 : vector<1x1xf32>
        %c0_97 = arith.constant 0 : index
        %c0_98 = arith.constant 0 : index
        %174 = vector.load %arg9[%c0_97, %c0_98] : memref<1x1xf32, #tpu.memory_space<vmem>>, vector<1x1xf32>
        tpu.vector_store %arg9[%c0_97, %c0_98], %173 {strides = array<i32>} : memref<1x1xf32, #tpu.memory_space<vmem>>, vector<1x1xf32>,
      } else {
      }
    } else {
    }
    return
  }
  func.func @transform_0(%arg0: i32, %arg1: i32) -> (i32, i32) {
    %c0_i32 = arith.constant 0 : i32
    %c0_i32_0 = arith.constant 0 : i32
    %c0_i32_1 = arith.constant 0 : i32
    return %c0_i32, %c0_i32_0 : i32, i32
  }
  func.func @transform_1(%arg0: i32, %arg1: i32) -> (i32, i32) {
    %c0_i32 = arith.constant 0 : i32
    %c0_i32_0 = arith.constant 0 : i32
    %c0_i32_1 = arith.constant 0 : i32
    return %c0_i32, %c0_i32_0 : i32, i32
  }
  func.func @transform_2(%arg0: i32, %arg1: i32) -> (i32, i32) {
    %c0_i32 = arith.constant 0 : i32
    return %arg0, %arg1 : i32, i32
  }
  func.func @transform_3(%arg0: i32, %arg1: i32) -> (i32, i32, i32) {
    %c0_i32 = arith.constant 0 : i32
    %c0_i32_0 = arith.constant 0 : i32
    return %c0_i32, %arg0, %arg1 : i32, i32, i32
  }
  func.func @transform_4(%arg0: i32, %arg1: i32) -> (i32, i32) {
    %c0_i32 = arith.constant 0 : i32
    %c0_i32_0 = arith.constant 0 : i32
    return %arg1, %c0_i32 : i32, i32
  }
  func.func @transform_5(%arg0: i32, %arg1: i32) -> (i32, i32) {
    %c0_i32 = arith.constant 0 : i32
    %c0_i32_0 = arith.constant 0 : i32
    %c0_i32_1 = arith.constant 0 : i32
    return %c0_i32, %c0_i32_0 : i32, i32
  }
  func.func @transform_6(%arg0: i32, %arg1: i32) -> (i32, i32) {
    %c0_i32 = arith.constant 0 : i32
    %c0_i32_0 = arith.constant 0 : i32
    %c0_i32_1 = arith.constant 0 : i32
    return %c0_i32, %c0_i32_0 : i32, i32
  }
  func.func @transform_7(%arg0: i32, %arg1: i32) -> (i32, i32) {
    %c0_i32 = arith.constant 0 : i32
    %c0_i32_0 = arith.constant 0 : i32
    %c0_i32_1 = arith.constant 0 : i32
    return %c0_i32, %c0_i32_0 : i32, i32
  }
}

</mosaic_0001>

<bundles_post_ra>
// kernel: tpu_custom_call.1
= control target key start
LH: loop header
LB: loop body
LE: loop exit
PB: predicated region body
PF: predicated region fallthrough
CT: control target
= control target key end

     0   :  { %14 = vsyncpa [#allocation10], 0  ;;  %s2907_s0 = inlined_call_operand.<no memory space> [shape: f32[1,1], index: 0, kind: input, shape index: {}]   ;;  %s2908_s1 = inlined_call_operand.<no memory space> [shape: f32[1,1], index: 1, kind: input, shape index: {}]   ;;  %s2909_s2 = inlined_call_operand.hbm [shape: bf16[8,1024], index: 2, kind: input, shape index: {}]   ;;  %s2910_s3 = inlined_call_operand.hbm [shape: bf16[2,8,1024], index: 3, kind: input, shape index: {}]   ;;  %s2911_s4 = inlined_call_operand.hbm [shape: bf16[1024,256], index: 4, kind: input, shape index: {}]   ;;  %s2912_s5 = inlined_call_operand.hbm [shape: f32[128,128], index: 5, kind: input, shape index: {}]   ;;  %s2913_s6 = inlined_call_operand.hbm [shape: f32[8,128], index: 6, kind: input, shape index: {}]   ;;  %s2914_s7 = inlined_call_operand.hbm [shape: f32[1,1], index: 7, kind: output, shape index: {}]  }
   0x1   :  { %15 = vsyncpa [#allocation13], 0 }
   0x2   :  { %16 = vsyncpa [#allocation16], 0  ;;  %s37_s26 = sshll.u32 %s2910_s3, 4  ;;  %s38_s26 = int_to_ptr.hbm [resolvable:$true] %s37_s26 }
   0x3   :  { %17 = vsyncpa [#allocation11], 0  ;;  %s2447_s27 = smov [#allocation12]   ;;  %s2448_s29 = smov 512  }
   0x4   :  { %s39_s28 = sshll.u32 %s2447_s27, 4  ;;  %s2449_s30 = smov 32   ;;  %s40_s28 = int_to_ptr.vmem [resolvable:$true] %s39_s28 }
   0x5   :  { %45 = dma.hbm_to_vmem [thread:$0]  %s38_s26, 1024, %s40_s28, [#allocation13], %s2448_s29, %s2448_s29, %s2449_s30  }
   0x6   :  { %s63_s10 = sshll.u32 %s2912_s5, 4  ;;  %s2450_s11 = smov [#allocation15]   ;;  %s64_s10 = int_to_ptr.hbm [resolvable:$true] %s63_s10 }
   0x7   :  { %s65_s12 = sshll.u32 %s2450_s11, 4  ;;  %s27_s15 = sshll.u32 %s2909_s2, 4  ;;  %s66_s12 = int_to_ptr.vmem [resolvable:$true] %s65_s12  ;;  %s28_s15 = int_to_ptr.hbm [resolvable:$true] %s27_s15 }
   0x8   :  { %s2451_s3 = smov 128   ;;  %s2452_s16 = smov 8  }
   0x9   :  { %71 = dma.hbm_to_vmem [thread:$0]  %s64_s10, 2048, %s66_s12, [#allocation16], %s2451_s3, %s2451_s3, %s2452_s16  }
   0xa   :  { %s50_s19 = sshll.u32 %s2911_s4, 4  ;;  %s2453_s20 = smov [#allocation9]   ;;  %s51_s19 = int_to_ptr.hbm [resolvable:$true] %s50_s19 }
   0xb   :  { %s29_s21 = sshll.u32 %s2453_s20, 4  ;;  %s2454_s5 = smov [#allocation14]   ;;  %s30_s21 = int_to_ptr.vmem [resolvable:$true] %s29_s21 }
   0xc   :  { %32 = dma.hbm_to_vmem [thread:$0]  %s28_s15, 512, %s30_s21, [#allocation10]  }
   0xd   :  { %s52_s22 = sshll.u32 %s2454_s5, 4  ;;  %s77_s2 = sshll.u32 %s2913_s6, 4  ;;  %s53_s22 = int_to_ptr.vmem [resolvable:$true] %s52_s22  ;;  %s78_s2 = int_to_ptr.hbm [resolvable:$true] %s77_s2 }
   0xe   :  { %58 = dma.hbm_to_vmem [thread:$0]  %s51_s19, 16384, %s53_s22, [#allocation13], %s2451_s3, %s2451_s3, %s2452_s16  }
   0xf   :  { %s2455_s25 = smov [#allocation17]  }
  0x10   :  { %s79_s26 = sshll.u32 %s2455_s25, 4  ;;  %s80_s26 = int_to_ptr.vmem [resolvable:$true] %s79_s26 }
  0x11   :  { %82 = dma.hbm_to_vmem [thread:$0]  %s78_s2, 128, %s80_s26, [#allocation16]  }
  0x12   :  { %2439 = dma.done.wait [#allocation10], 512  }
  0x13   :  { %2440 = vsyncadd [#allocation10], 4294966784 }
  0x14   :  { %2441 = dma.done.wait [#allocation13], 17408  }
  0x15   :  { %2442 = vsyncadd [#allocation13], 4294949888 }
  0x16   :  { %2443 = dma.done.wait [#allocation16], 2176  }
  0x17   :  { %2444 = vsyncadd [#allocation16], 4294965120  ;;  %v1688_v0 = vld [vmem:[#allocation14 + $0x70] sm:$0xf]  ;;  %v2157_v1 = vld [vmem:[#allocation14 + $0x74] sm:$0xf0]  ;;  %s1555_s11 = smul.f32 %s2907_s0, %s2907_s0 }
  0x18   :  { %v1816_v2 = vld [vmem:[#allocation14 + $0x170] sm:$0xf]  ;;  %v2513_v3 = vor.u32 %v2157_v1, %v1688_v0  ;;  %v2189_v4 = vld [vmem:[#allocation14 + $0x174] sm:$0xf0]  ;;  %v1680_v9 = vld [vmem:[#allocation14 + $0x60] sm:$0xf] }
  0x19   :  { %v1880_v5 = vld [vmem:[#allocation14 + $0x1f0] sm:$0xf]  ;;  %v2205_v6 = vld [vmem:[#allocation14 + $0x1f4] sm:$0xf0]  ;;  %v2515_v7 = vor.u32 %v2189_v4, %v1816_v2  ;;  %v2155_v10 = vld [vmem:[#allocation14 + $0x64] sm:$0xf0] }
  0x1a   :  { %v2517_v8 = vor.u32 %v2205_v6, %v1880_v5  ;;  %v1752_v11 = vld [vmem:[#allocation14 + $0xf0] sm:$0xf]  ;;  %922 = vmatpush.bf16.msra.mxu0 %v2513_v3  ;;  %v2520_v12 = vor.u32 %v2155_v10, %v1680_v9  ;;  %v2173_v13 = vld [vmem:[#allocation14 + $0xf4] sm:$0xf0]  ;;  %v1808_v14 = vld [vmem:[#allocation14 + $0x160] sm:$0xf] }
  0x1b   :  { %v2187_v15 = vld [vmem:[#allocation14 + $0x164] sm:$0xf0]  ;;  %948 = vmatpush.bf16.msra.mxu2 %v2515_v7  ;;  %v2524_v16 = vor.u32 %v2173_v13, %v1752_v11  ;;  %v1872_v18 = vld [vmem:[#allocation14 + $0x1e0] sm:$0xf]  ;;  %v1672_v20 = vld [vmem:[#allocation14 + $0x50] sm:$0xf] }
  0x1c   :  { %961 = vmatpush.bf16.msra.mxu3 %v2517_v8  ;;  %v2526_v17 = vor.u32 %v2187_v15, %v1808_v14  ;;  %v2203_v19 = vld [vmem:[#allocation14 + $0x1e4] sm:$0xf0]  ;;  %v2153_v22 = vld [vmem:[#allocation14 + $0x54] sm:$0xf0]  ;;  %v1744_v23 = vld [vmem:[#allocation14 + $0xe0] sm:$0xf] }
  0x1d   :  { %v2528_v21 = vor.u32 %v2203_v19, %v1872_v18  ;;  %v2171_v24 = vld [vmem:[#allocation14 + $0xe4] sm:$0xf0]  ;;  %935 = vmatpush.bf16.msra.mxu1 %v2524_v16  ;;  %v1800_v26 = vld [vmem:[#allocation14 + $0x150] sm:$0xf]  ;;  %v2185_v27 = vld [vmem:[#allocation14 + $0x154] sm:$0xf0]  ;;  %v2534_v29 = vor.u32 %v2153_v22, %v1672_v20 }
  0x1e   :  { %v2531_v25 = vor.u32 %v2171_v24, %v1744_v23  ;;  %v1864_v28 = vld [vmem:[#allocation14 + $0x1d0] sm:$0xf]  ;;  %923 = vmatpush.bf16.msra.mxu0 %v2520_v12  ;;  %v2201_v30 = vld [vmem:[#allocation14 + $0x1d4] sm:$0xf0]  ;;  %v1664_v31 = vld [vmem:[#allocation14 + $0x40] sm:$0xf]  ;;  %v2538_v33 = vor.u32 %v2185_v27, %v1800_v26 }
  0x1f   :  { %v2151_v32 = vld [vmem:[#allocation14 + $0x44] sm:$0xf0]  ;;  %949 = vmatpush.bf16.msra.mxu2 %v2526_v17  ;;  %v2540_v34 = vor.u32 %v2201_v30, %v1864_v28  ;;  %v1736_v35 = vld [vmem:[#allocation14 + $0xd0] sm:$0xf]  ;;  %v2169_v36 = vld [vmem:[#allocation14 + $0xd4] sm:$0xf0] }
  0x20   :  { %962 = vmatpush.bf16.msra.mxu3 %v2528_v21  ;;  %v1792_v37 = vld [vmem:[#allocation14 + $0x140] sm:$0xf]  ;;  %v2183_v38 = vld [vmem:[#allocation14 + $0x144] sm:$0xf0]  ;;  %v2543_v41 = vor.u32 %v2169_v36, %v1736_v35  ;;  %v2546_v42 = vor.u32 %v2151_v32, %v1664_v31  ;;  %v1656_v47 = vld [vmem:[#allocation14 + $0x30] sm:$0xf] }
  0x21   :  { %v1856_v39 = vld [vmem:[#allocation14 + $0x1c0] sm:$0xf]  ;;  %v2199_v40 = vld [vmem:[#allocation14 + $0x1c4] sm:$0xf0]  ;;  %936 = vmatpush.bf16.msra.mxu1 %v2531_v25  ;;  %v2550_v45 = vor.u32 %v2183_v38, %v1792_v37  ;;  %v2149_v48 = vld [vmem:[#allocation14 + $0x34] sm:$0xf0] }
  0x22   :  { %924 = vmatpush.bf16.msra.mxu0 %v2534_v29  ;;  %v1728_v43 = vld [vmem:[#allocation14 + $0xc0] sm:$0xf]  ;;  %v2167_v44 = vld [vmem:[#allocation14 + $0xc4] sm:$0xf0]  ;;  %v2552_v46 = vor.u32 %v2199_v40, %v1856_v39  ;;  %v1784_v49 = vld [vmem:[#allocation14 + $0x130] sm:$0xf]  ;;  %v2558_v54 = vor.u32 %v2149_v48, %v1656_v47 }
  0x23   :  { %950 = vmatpush.bf16.msra.mxu2 %v2538_v33  ;;  %v2181_v50 = vld [vmem:[#allocation14 + $0x134] sm:$0xf0]  ;;  %v1848_v51 = vld [vmem:[#allocation14 + $0x1b0] sm:$0xf]  ;;  %v2555_v53 = vor.u32 %v2167_v44, %v1728_v43  ;;  %v1648_v59 = vld [vmem:[#allocation14 + $0x20] sm:$0xf] }
  0x24   :  { %963 = vmatpush.bf16.msra.mxu3 %v2540_v34  ;;  %v2197_v52 = vld [vmem:[#allocation14 + $0x1b4] sm:$0xf0]  ;;  %v1720_v55 = vld [vmem:[#allocation14 + $0xb0] sm:$0xf]  ;;  %v2562_v57 = vor.u32 %v2181_v50, %v1784_v49  ;;  %v2147_v60 = vld [vmem:[#allocation14 + $0x24] sm:$0xf0] }
  0x25   :  { %937 = vmatpush.bf16.msra.mxu1 %v2543_v41  ;;  %v2165_v56 = vld [vmem:[#allocation14 + $0xb4] sm:$0xf0]  ;;  %v2564_v58 = vor.u32 %v2197_v52, %v1848_v51  ;;  %v1776_v61 = vld [vmem:[#allocation14 + $0x120] sm:$0xf]  ;;  %v2179_v62 = vld [vmem:[#allocation14 + $0x124] sm:$0xf0]  ;;  %v2570_v2 = vor.u32 %v2147_v60, %v1648_v59 }
  0x26   :  { %925 = vmatpush.bf16.msra.mxu0 %v2546_v42  ;;  %v1840_v63 = vld [vmem:[#allocation14 + $0x1a0] sm:$0xf]  ;;  %v2195_v0 = vld [vmem:[#allocation14 + $0x1a4] sm:$0xf0]  ;;  %v2567_v1 = vor.u32 %v2165_v56, %v1720_v55  ;;  %v2574_v6 = vor.u32 %v2179_v62, %v1776_v61  ;;  %v1640_v10 = vld [vmem:[#allocation14 + $0x10] sm:$0xf] }
  0x27   :  { %951 = vmatpush.bf16.msra.mxu2 %v2550_v45  ;;  %v1712_v4 = vld [vmem:[#allocation14 + $0xa0] sm:$0xf]  ;;  %v2163_v5 = vld [vmem:[#allocation14 + $0xa4] sm:$0xf0]  ;;  %v2576_v9 = vor.u32 %v2195_v0, %v1840_v63  ;;  %v2145_v11 = vld [vmem:[#allocation14 + $0x14] sm:$0xf0] }
  0x28   :  { %964 = vmatpush.bf16.msra.mxu3 %v2552_v46  ;;  %v1768_v13 = vld [vmem:[#allocation14 + $0x110] sm:$0xf]  ;;  %v2177_v14 = vld [vmem:[#allocation14 + $0x114] sm:$0xf0]  ;;  %v2579_v19 = vor.u32 %v2163_v5, %v1712_v4  ;;  %v1632_v20 = vld [vmem:[#allocation14] sm:$0xf]  ;;  %v2582_v22 = vor.u32 %v2145_v11, %v1640_v10 }
  0x29   :  { %938 = vmatpush.bf16.msra.mxu1 %v2555_v53  ;;  %v1832_v15 = vld [vmem:[#allocation14 + $0x190] sm:$0xf]  ;;  %v2193_v18 = vld [vmem:[#allocation14 + $0x194] sm:$0xf0]  ;;  %v2143_v23 = vld [vmem:[#allocation14 + $0x4] sm:$0xf0]  ;;  %v2586_v27 = vor.u32 %v2177_v14, %v1768_v13 }
  0x2a   :  { %926 = vmatpush.bf16.msra.mxu0 %v2558_v54  ;;  %v1704_v24 = vld [vmem:[#allocation14 + $0x90] sm:$0xf]  ;;  %v2161_v26 = vld [vmem:[#allocation14 + $0x94] sm:$0xf0]  ;;  %v2588_v28 = vor.u32 %v2193_v18, %v1832_v15  ;;  %v1760_v30 = vld [vmem:[#allocation14 + $0x100] sm:$0xf]  ;;  %v2594_v44 = vor.u32 %v2143_v23, %v1632_v20 }
  0x2b   :  { %952 = vmatpush.bf16.msra.mxu2 %v2562_v57  ;;  %v2175_v31 = vld [vmem:[#allocation14 + $0x104] sm:$0xf0]  ;;  %v1944_v32 = vld [vmem:[#allocation14 + $0x270] sm:$0xf]  ;;  %v2221_v35 = vld [vmem:[#allocation14 + $0x274] sm:$0xf0]  ;;  %v2591_v38 = vor.u32 %v2161_v26, %v1704_v24 }
  0x2c   :  { %965 = vmatpush.bf16.msra.mxu3 %v2564_v58  ;;  %2991 = vst [vmem:[#allocation23_spill] sm:$0xff] %v2588_v28  ;;  %v2072_v36 = vld [vmem:[#allocation14 + $0x370] sm:$0xf]  ;;  %v2253_v37 = vld [vmem:[#allocation14 + $0x374] sm:$0xf0]  ;;  %v2598_v50 = vor.u32 %v2175_v31, %v1760_v30  ;;  %v2600_v51 = vor.u32 %v2221_v35, %v1944_v32  ;;  %v251_v13 = vld [vmem:[#allocation9 + $0x8] sm:$0xff] }
  0x2d   :  { %939 = vmatpush.bf16.msra.mxu1 %v2567_v1  ;;  %2992 = vst [vmem:[#allocation24_spill] sm:$0xff] %v2591_v38  ;;  %v1824_v39 = vld [vmem:[#allocation14 + $0x180] sm:$0xf]  ;;  %v2191_v40 = vld [vmem:[#allocation14 + $0x184] sm:$0xf0]  ;;  %v2602_v56 = vor.u32 %v2253_v37, %v2072_v36  ;;  %v260_v20 = vunpack.c.l.b16 %v251_v13  ;;  %v261_v23 = vunpack.c.h.b16 %v251_v13  ;;  %s1470_s27 = ssub.f32 1.0, %s2907_s0 }
  0x2e   :  { %927 = vmatpush.bf16.msra.mxu0 %v2570_v2  ;;  %v2136_v43 = vld [vmem:[#allocation14 + $0x3f0] sm:$0xf]  ;;  %2993 = vst [vmem:[#allocation25_spill] sm:$0xff] %v2594_v44  ;;  %v2269_v47 = vld [vmem:[#allocation14 + $0x3f4] sm:$0xf0]  ;;  %v2604_v59 = vor.u32 %v2191_v40, %v1824_v39  ;;  %v250_v31 = vld [vmem:[#allocation9] sm:$0xff] }
  0x2f   :  { %953 = vmatpush.bf16.msra.mxu2 %v2574_v6  ;;  %v1696_v48 = vld [vmem:[#allocation14 + $0x80] sm:$0xf]  ;;  %v2159_v49 = vld [vmem:[#allocation14 + $0x84] sm:$0xf0]  ;;  %2994 = vst [vmem:[#allocation26_spill] sm:$0xff] %v2598_v50  ;;  %v2607_v62 = vor.u32 %v2269_v47, %v2136_v43  ;;  %v2626_v37 = vpack.c.b16 %v260_v20, %v260_v20  ;;  %v258_v39 = vunpack.c.l.b16 %v250_v31  ;;  %v2628_v40 = vpack.c.b16 %v261_v23, %v261_v23  ;;  %s1556_s12 = smul.f32 5000.0, %s1555_s11 }
  0x30   :  { %966 = vmatpush.bf16.msra.mxu3 %v2576_v9  ;;  %2995 = vst [vmem:[#allocation27_spill] sm:$0xff] %v2600_v51  ;;  %v2008_v52 = vld [vmem:[#allocation14 + $0x2f0] sm:$0xf]  ;;  %v2237_v55 = vld [vmem:[#allocation14 + $0x2f4] sm:$0xf0]  ;;  %v2609_v63 = vor.u32 %v2159_v49, %v1696_v48  ;;  %v259_v49 = vunpack.c.h.b16 %v250_v31  ;;  %vm109_vm5 = vcmask 7168  }
  0x31   :  { %940 = vmatpush.bf16.msra.mxu1 %v2579_v19  ;;  %2996 = vst [vmem:[#allocation28_spill] sm:$0xff] %v2602_v56  ;;  %v1936_v60 = vld [vmem:[#allocation14 + $0x260] sm:$0xf]  ;;  %v2219_v61 = vld [vmem:[#allocation14 + $0x264] sm:$0xf0]  ;;  %v2612_v5 = vor.u32 %v2237_v55, %v2008_v52  ;;  %s2457_s18 = smov [#allocation18]  }
  0x32   :  { %928 = vmatpush.bf16.msra.mxu0 %v2582_v22  ;;  %2997 = vst [vmem:[#allocation29_spill] sm:$0xff] %v2604_v59  ;;  %v2064_v0 = vld [vmem:[#allocation14 + $0x360] sm:$0xf]  ;;  %v2251_v4 = vld [vmem:[#allocation14 + $0x364] sm:$0xf0]  ;;  %v2616_v14 = vor.u32 %v2219_v61, %v1936_v60  ;;  %v2637_v61 = vpack.c.b16 %v258_v39, %v258_v39  ;;  %s1616_s19 = sshll.u32 %s2457_s18, 4  ;;  %s1617_s19 = int_to_ptr.vmem [resolvable:$true] %s1616_s19 }
  0x33   :  { %954 = vmatpush.bf16.msra.mxu2 %v2586_v27  ;;  %2998 = vst [vmem:[#allocation30_spill] sm:$0xff] %v2607_v62  ;;  %v2128_v10 = vld [vmem:[#allocation14 + $0x3e0] sm:$0xf]  ;;  %v2267_v11 = vld [vmem:[#allocation14 + $0x3e4] sm:$0xf0]  ;;  %v2620_v24 = vor.u32 %v2251_v4, %v2064_v0  ;;  %s1618_s5 = sshll.u32 %s2914_s7, 4  ;;  %s1619_s5 = int_to_ptr.hbm [resolvable:$true] %s1618_s5 }
  0x34   :  { %967 = vmatpush.bf16.msra.mxu3 %v2588_v28  ;;  %2999 = vst [vmem:[#allocation31_spill] sm:$0xff] %v2609_v63  ;;  %v2000_v15 = vld [vmem:[#allocation14 + $0x2e0] sm:$0xf]  ;;  %v2235_v18 = vld [vmem:[#allocation14 + $0x2e4] sm:$0xf0]  ;;  %v2624_v32 = vor.u32 %v2267_v11, %v2128_v10  ;;  %v2643_v11 = vpack.c.b16 %v259_v49, %v259_v49  ;;  %vm1609_vm8 = vcmask 0  }
  0x35   :  { %941 = vmatpush.bf16.msra.mxu1 %v2591_v38  ;;  %3000 = vst [vmem:[#allocation32_spill] sm:$0xff] %v2612_v5  ;;  %v1928_v26 = vld [vmem:[#allocation14 + $0x250] sm:$0xf]  ;;  %v2217_v30 = vld [vmem:[#allocation14 + $0x254] sm:$0xf0]  ;;  %v2631_v43 = vor.u32 %v2235_v18, %v2000_v15 }
  0x36   :  { %929 = vmatpush.bf16.msra.mxu0 %v2594_v44  ;;  %3001 = vst [vmem:[#allocation33_spill] sm:$0xff] %v2616_v14  ;;  %v2056_v35 = vld [vmem:[#allocation14 + $0x350] sm:$0xf]  ;;  %v2249_v36 = vld [vmem:[#allocation14 + $0x354] sm:$0xf0]  ;;  %v2634_v52 = vor.u32 %v2217_v30, %v1928_v26 }
  0x37   :  { %955 = vmatpush.bf16.msra.mxu2 %v2598_v50  ;;  %3002 = vst [vmem:[#allocation34_spill] sm:$0xff] %v2620_v24  ;;  %v2120_v47 = vld [vmem:[#allocation14 + $0x3d0] sm:$0xf]  ;;  %v2265_v48 = vld [vmem:[#allocation14 + $0x3d4] sm:$0xf0]  ;;  %v2640_v0 = vor.u32 %v2249_v36, %v2056_v35 }
  0x38   :  { %968 = vmatpush.bf16.msra.mxu3 %v2604_v59  ;;  %3003 = vst [vmem:[#allocation35_spill] sm:$0xff] %v2624_v32  ;;  %v1992_v55 = vld [vmem:[#allocation14 + $0x2d0] sm:$0xf]  ;;  %v2233_v60 = vld [vmem:[#allocation14 + $0x2d4] sm:$0xf0]  ;;  %v2646_v13 = vor.u32 %v2265_v48, %v2120_v47 }
  0x39   :  { %942 = vmatpush.bf16.msra.mxu1 %v2609_v63  ;;  %3004 = vst [vmem:[#allocation36_spill] sm:$0xff] %v2631_v43  ;;  %v1920_v4 = vld [vmem:[#allocation14 + $0x240] sm:$0xf]  ;;  %v2215_v10 = vld [vmem:[#allocation14 + $0x244] sm:$0xf0]  ;;  %930 = vmatmul.bf16.vlgmr.msra.gmra.mxu0 %v2637_v61  ;;  %v2650_v20 = vor.u32 %v2233_v60, %v1992_v55 }
  0x3a   :  { %974 = vmatpush.bf16.msrb.mxu0 %v2600_v51  ;;  %3005 = vst [vmem:[#allocation37_spill] sm:$0xff] %v2634_v52  ;;  %956 = vmatmul.bf16.vlgmr.msra.gmra.mxu2 %v2626_v37  ;;  %v2048_v15 = vld [vmem:[#allocation14 + $0x340] sm:$0xf]  ;;  %v2247_v18 = vld [vmem:[#allocation14 + $0x344] sm:$0xf0]  ;;  %v2653_v30 = vor.u32 %v2215_v10, %v1920_v4 }
  0x3b   :  { %1000 = vmatpush.bf16.msrb.mxu2 %v2602_v56  ;;  %3006 = vst [vmem:[#allocation38_spill] sm:$0xff] %v2640_v0  ;;  %969 = vmatmul.bf16.vlgmr.msra.gmra.mxu3 %v2628_v40  ;;  %v2112_v23 = vld [vmem:[#allocation14 + $0x3c0] sm:$0xf]  ;;  %v2263_v26 = vld [vmem:[#allocation14 + $0x3c4] sm:$0xf0]  ;;  %v2657_v36 = vor.u32 %v2247_v18, %v2048_v15 }
  0x3c   :  { %1013 = vmatpush.bf16.msrb.mxu3 %v2607_v62  ;;  %3007 = vst [vmem:[#allocation39_spill] sm:$0xff] %v2646_v13  ;;  %v1984_v31 = vld [vmem:[#allocation14 + $0x2c0] sm:$0xf]  ;;  %v2231_v35 = vld [vmem:[#allocation14 + $0x2c4] sm:$0xf0]  ;;  %943 = vmatmul.bf16.vlgmr.msra.gmra.mxu1 %v2643_v11  ;;  %v2660_v48 = vor.u32 %v2263_v26, %v2112_v23 }
  0x3d   :  { %987 = vmatpush.bf16.msrb.mxu1 %v2612_v5  ;;  %3008 = vst [vmem:[#allocation40_spill] sm:$0xff] %v2650_v20  ;;  %v1912_v39 = vld [vmem:[#allocation14 + $0x230] sm:$0xf]  ;;  %v2213_v47 = vld [vmem:[#allocation14 + $0x234] sm:$0xf0]  ;;  %v2663_v60 = vor.u32 %v2231_v35, %v1984_v31 }
  0x3e   :  { %975 = vmatpush.bf16.msrb.mxu0 %v2616_v14  ;;  %3009 = vst [vmem:[#allocation41_spill] sm:$0xff] %v2653_v30  ;;  %v2040_v49 = vld [vmem:[#allocation14 + $0x330] sm:$0xf]  ;;  %v2245_v55 = vld [vmem:[#allocation14 + $0x334] sm:$0xf0] }
  0x3f   :  { %1001 = vmatpush.bf16.msrb.mxu2 %v2620_v24  ;;  %3010 = vst [vmem:[#allocation42_spill] sm:$0xff] %v2657_v36  ;;  %v2104_v4 = vld [vmem:[#allocation14 + $0x3b0] sm:$0xf]  ;;  %v2261_v10 = vld [vmem:[#allocation14 + $0x3b4] sm:$0xf0] }
  0x40   :  { %1014 = vmatpush.bf16.msrb.mxu3 %v2624_v32  ;;  %3011 = vst [vmem:[#allocation43_spill] sm:$0xff] %v2660_v48  ;;  %v1976_v15 = vld [vmem:[#allocation14 + $0x2b0] sm:$0xf]  ;;  %v2229_v18 = vld [vmem:[#allocation14 + $0x2b4] sm:$0xf0] }
  0x41   :  { %988 = vmatpush.bf16.msrb.mxu1 %v2631_v43  ;;  %3012 = vst [vmem:[#allocation44_spill] sm:$0xff] %v2663_v60  ;;  %v2666_v43 = vor.u32 %v2213_v47, %v1912_v39  ;;  %v1904_v23 = vld [vmem:[#allocation14 + $0x220] sm:$0xf]  ;;  %v2211_v26 = vld [vmem:[#allocation14 + $0x224] sm:$0xf0]  ;;  %v252_v5 = vld [vmem:[#allocation9 + $0x10] sm:$0xff] }
  0x42   :  { %976 = vmatpush.bf16.msrb.mxu0 %v2634_v52  ;;  %v2032_v31 = vld [vmem:[#allocation14 + $0x320] sm:$0xf]  ;;  %v2243_v35 = vld [vmem:[#allocation14 + $0x324] sm:$0xf0]  ;;  %v2257_v52 = vld [vmem:[#allocation14 + $0x394] sm:$0xf0] }
  0x43   :  { %1002 = vmatpush.bf16.msrb.mxu2 %v2640_v0  ;;  %3013 = vst [vmem:[#allocation45_spill] sm:$0xff] %v2666_v43  ;;  %v2669_v0 = vor.u32 %v2245_v55, %v2040_v49  ;;  %v2096_v39 = vld [vmem:[#allocation14 + $0x3a0] sm:$0xf]  ;;  %v2259_v47 = vld [vmem:[#allocation14 + $0x3a4] sm:$0xf0] }
  0x44   :  { %1015 = vmatpush.bf16.msrb.mxu3 %v2646_v13  ;;  %v2672_v13 = vor.u32 %v2261_v10, %v2104_v4  ;;  %v1968_v49 = vld [vmem:[#allocation14 + $0x2a0] sm:$0xf]  ;;  %v2227_v55 = vld [vmem:[#allocation14 + $0x2a4] sm:$0xf0]  ;;  %v1896_v4 = vld [vmem:[#allocation14 + $0x210] sm:$0xf] }
  0x45   :  { %989 = vmatpush.bf16.msrb.mxu1 %v2650_v20  ;;  %3014 = vst [vmem:[#allocation46_spill] sm:$0xff] %v2669_v0  ;;  %v2675_v20 = vor.u32 %v2229_v18, %v1976_v15  ;;  %v2209_v10 = vld [vmem:[#allocation14 + $0x214] sm:$0xf0]  ;;  %v2088_v18 = vld [vmem:[#allocation14 + $0x390] sm:$0xf] }
  0x46   :  { %977 = vmatpush.bf16.msrb.mxu0 %v2653_v30  ;;  %3015 = vst [vmem:[#allocation47_spill] sm:$0xff] %v2672_v13  ;;  %v2678_v30 = vor.u32 %v2211_v26, %v1904_v23  ;;  %v2241_v15 = vld [vmem:[#allocation14 + $0x314] sm:$0xf0]  ;;  %v2687_v23 = vor.u32 %v2227_v55, %v1968_v49  ;;  %v1888_v26 = vld [vmem:[#allocation14 + $0x200] sm:$0xf]  ;;  %v2696_v49 = vor.u32 %v2257_v52, %v2088_v18  ;;  %v262_v52 = vunpack.c.l.b16 %v252_v5 }
  0x47   :  { %1003 = vmatpush.bf16.msrb.mxu2 %v2657_v36  ;;  %3016 = vst [vmem:[#allocation48_spill] sm:$0xff] %v2675_v20  ;;  %v2681_v36 = vor.u32 %v2243_v35, %v2032_v31  ;;  %v1960_v32 = vld [vmem:[#allocation14 + $0x290] sm:$0xf]  ;;  %v2690_v31 = vor.u32 %v2209_v10, %v1896_v4  ;;  %v2225_v35 = vld [vmem:[#allocation14 + $0x294] sm:$0xf0] }
  0x48   :  { %1016 = vmatpush.bf16.msrb.mxu3 %v2660_v48  ;;  %3017 = vst [vmem:[#allocation49_spill] sm:$0xff] %v2678_v30  ;;  %v2024_v48 = vld [vmem:[#allocation14 + $0x310] sm:$0xf]  ;;  %v2239_v24 = vld [vmem:[#allocation14 + $0x304] sm:$0xf0]  ;;  %v2699_v4 = vor.u32 %v2225_v35, %v1960_v32 }
  0x49   :  { %990 = vmatpush.bf16.msrb.mxu1 %v2663_v60  ;;  %3018 = vst [vmem:[#allocation50_spill] sm:$0xff] %v2681_v36  ;;  %v2684_v60 = vor.u32 %v2259_v47, %v2096_v39  ;;  %v2693_v39 = vor.u32 %v2241_v15, %v2024_v48  ;;  %v2156_v47 = vld [vmem:[#allocation14 + $0x74] sm:$0xf]  ;;  %v1690_v55 = vld [vmem:[#allocation14 + $0x78] sm:$0xf0] }
  0x4a   :  { %978 = vmatpush.bf16.msrb.mxu0 %v2666_v43  ;;  %3020 = vst [vmem:[#allocation52_spill] sm:$0xff] %v2687_v23  ;;  %v2207_v43 = vld [vmem:[#allocation14 + $0x204] sm:$0xf0]  ;;  %v1818_v14 = vld [vmem:[#allocation14 + $0x178] sm:$0xf0]  ;;  %v1693_v59 = vor.u32 %v2156_v47, %v1690_v55 }
  0x4b   :  { %1004 = vmatpush.bf16.msrb.mxu2 %v2669_v0  ;;  %3019 = vst [vmem:[#allocation51_spill] sm:$0xff] %v2684_v60  ;;  %v2016_v0 = vld [vmem:[#allocation14 + $0x300] sm:$0xf]  ;;  %v2204_v63 = vld [vmem:[#allocation14 + $0x1f4] sm:$0xf]  ;;  %v2702_v48 = vor.u32 %v2207_v43, %v1888_v26 }
  0x4c   :  { %1017 = vmatpush.bf16.msrb.mxu3 %v2672_v13  ;;  %3021 = vst [vmem:[#allocation53_spill] sm:$0xff] %v2690_v31  ;;  %v253_v13 = vld [vmem:[#allocation9 + $0x18] sm:$0xff]  ;;  %v2080_v10 = vld [vmem:[#allocation14 + $0x380] sm:$0xf]  ;;  %v2705_v18 = vor.u32 %v2239_v24, %v2016_v0  ;;  %v2154_v56 = vld [vmem:[#allocation14 + $0x64] sm:$0xf]  ;;  %v263_v24 = vunpack.c.h.b16 %v252_v5 }
  0x4d   :  { %991 = vmatpush.bf16.msrb.mxu1 %v2675_v20  ;;  %3022 = vst [vmem:[#allocation54_spill] sm:$0xff] %v2693_v39  ;;  %v2188_v20 = vld [vmem:[#allocation14 + $0x174] sm:$0xf]  ;;  %v264_v15 = vunpack.c.l.b16 %v253_v13  ;;  %v1952_v62 = vld [vmem:[#allocation14 + $0x280] sm:$0xf] }
  0x4e   :  { %979 = vmatpush.bf16.msrb.mxu0 %v2678_v30  ;;  %3023 = vst [vmem:[#allocation55_spill] sm:$0xff] %v2696_v49  ;;  %v2255_v30 = vld [vmem:[#allocation14 + $0x384] sm:$0xf0]  ;;  %v1821_v32 = vor.u32 %v2188_v20, %v1818_v14  ;;  %v2172_v43 = vld [vmem:[#allocation14 + $0xf4] sm:$0xf]  ;;  %v2723_v55 = vpack.c.b16 %v263_v24, %v263_v24 }
  0x4f   :  { %1005 = vmatpush.bf16.msrb.mxu2 %v2681_v36  ;;  %3024 = vst [vmem:[#allocation56_spill] sm:$0xff] %v2699_v4  ;;  %v1882_v36 = vld [vmem:[#allocation14 + $0x1f8] sm:$0xf0]  ;;  %v2708_v35 = vor.u32 %v2255_v30, %v2080_v10  ;;  %v2186_v38 = vld [vmem:[#allocation14 + $0x164] sm:$0xf]  ;;  %v2714_v0 = vpack.c.b16 %v264_v15, %v264_v15 }
  0x50   :  { %1018 = vmatpush.bf16.msrb.mxu3 %v2684_v60  ;;  %3025 = vst [vmem:[#allocation57_spill] sm:$0xff] %v2702_v48  ;;  %v2223_v60 = vld [vmem:[#allocation14 + $0x284] sm:$0xf0]  ;;  %v1885_v26 = vor.u32 %v2204_v63, %v1882_v36  ;;  %v1754_v50 = vld [vmem:[#allocation14 + $0xf8] sm:$0xf0] }
  0x51   :  { %992 = vmatpush.bf16.msrb.mxu1 %v2687_v23  ;;  %3026 = vst [vmem:[#allocation58_spill] sm:$0xff] %v2705_v18  ;;  %v265_v23 = vunpack.c.h.b16 %v253_v13  ;;  %v2711_v51 = vor.u32 %v2223_v60, %v1952_v62  ;;  %v2716_v13 = vpack.c.b16 %v262_v52, %v262_v52  ;;  %v2202_v14 = vld [vmem:[#allocation14 + $0x1e4] sm:$0xf]  ;;  %v1874_v20 = vld [vmem:[#allocation14 + $0x1e8] sm:$0xf0]  ;;  %v1757_v62 = vor.u32 %v2172_v43, %v1754_v50 }
  0x52   :  { %980 = vmatpush.bf16.msrb.mxu0 %v2690_v31  ;;  %3027 = vst [vmem:[#allocation59_spill] sm:$0xff] %v2708_v35  ;;  %v1682_v31 = vld [vmem:[#allocation14 + $0x68] sm:$0xf0]  ;;  %v2152_v5 = vld [vmem:[#allocation14 + $0x54] sm:$0xf]  ;;  %v1877_v10 = vor.u32 %v2202_v14, %v1874_v20 }
  0x53   :  { %1006 = vmatpush.bf16.msrb.mxu2 %v2693_v39  ;;  %3028 = vst [vmem:[#allocation60_spill] sm:$0xff] %v2711_v51  ;;  %v1810_v39 = vld [vmem:[#allocation14 + $0x168] sm:$0xf0]  ;;  %v2719_v30 = vpack.c.b16 %v265_v23, %v265_v23  ;;  %v1685_v63 = vor.u32 %v2154_v56, %v1682_v31  ;;  %v1674_v60 = vld [vmem:[#allocation14 + $0x58] sm:$0xf0] }
  0x54   :  { %1019 = vmatpush.bf16.msrb.mxu3 %v2696_v49  ;;  %v1813_v36 = vor.u32 %v2186_v38, %v1810_v39  ;;  %v2170_v47 = vld [vmem:[#allocation14 + $0xe4] sm:$0xf]  ;;  %v1746_v15 = vld [vmem:[#allocation14 + $0xe8] sm:$0xf0]  ;;  %v2184_v52 = vld [vmem:[#allocation14 + $0x154] sm:$0xf]  ;;  %v1677_v38 = vor.u32 %v2152_v5, %v1674_v60 }
  0x55   :  { %993 = vmatpush.bf16.msrb.mxu1 %v2699_v4  ;;  %v2200_v56 = vld [vmem:[#allocation14 + $0x1d4] sm:$0xf]  ;;  %v1866_v23 = vld [vmem:[#allocation14 + $0x1d8] sm:$0xf0]  ;;  %v1749_v50 = vor.u32 %v2170_v47, %v1746_v15  ;;  %v2150_v39 = vld [vmem:[#allocation14 + $0x44] sm:$0xf] }
  0x56   :  { %981 = vmatpush.bf16.msrb.mxu0 %v2702_v48  ;;  %v2168_v43 = vld [vmem:[#allocation14 + $0xd4] sm:$0xf]  ;;  %v1738_v24 = vld [vmem:[#allocation14 + $0xd8] sm:$0xf0]  ;;  %v2182_v14 = vld [vmem:[#allocation14 + $0x144] sm:$0xf] }
  0x57   :  { %1007 = vmatpush.bf16.msrb.mxu2 %v2705_v18  ;;  %v1794_v20 = vld [vmem:[#allocation14 + $0x148] sm:$0xf0]  ;;  %v1658_v5 = vld [vmem:[#allocation14 + $0x38] sm:$0xf0]  ;;  %v2166_v60 = vld [vmem:[#allocation14 + $0xc4] sm:$0xf] }
  0x58   :  { %1020 = vmatpush.bf16.msrb.mxu3 %v2708_v35  ;;  %v1858_v35 = vld [vmem:[#allocation14 + $0x1c8] sm:$0xf0]  ;;  %v2144_v4 = vld [vmem:[#allocation14 + $0x14] sm:$0xf]  ;;  %v2190_v49 = vld [vmem:[#allocation14 + $0x184] sm:$0xf] }
  0x59   :  { %994 = vmatpush.bf16.msrb.mxu1 %v2711_v51  ;;  %982 = vmatmul.bf16.vlgmr.msrb.gmra.mxu0 %v2716_v13  ;;  %v2198_v51 = vld [vmem:[#allocation14 + $0x1c4] sm:$0xf]  ;;  %v1730_v15 = vld [vmem:[#allocation14 + $0xc8] sm:$0xf0]  ;;  %v2236_v44 = vld [vmem:[#allocation14 + $0x2f4] sm:$0xf] }
  0x5a   :  { %1026 = vmatpush.bf16.msra.mxu0 %v1693_v59  ;;  %v1802_v59 = vld [vmem:[#allocation14 + $0x158] sm:$0xf0]  ;;  %1008 = vmatmul.bf16.vlgmr.msrb.gmra.mxu2 %v2714_v0  ;;  %v1861_v47 = vor.u32 %v2198_v51, %v1858_v35  ;;  %v2194_v51 = vld [vmem:[#allocation14 + $0x1a4] sm:$0xf]  ;;  %v1842_v35 = vld [vmem:[#allocation14 + $0x1a8] sm:$0xf0] }
  0x5b   :  { %1052 = vmatpush.bf16.msra.mxu2 %v1821_v32  ;;  %1021 = vmatmul.bf16.vlgmr.msrb.gmra.mxu3 %v2719_v30  ;;  %v1805_v31 = vor.u32 %v2184_v52, %v1802_v59  ;;  %v1666_v32 = vld [vmem:[#allocation14 + $0x48] sm:$0xf0]  ;;  %v2180_v52 = vld [vmem:[#allocation14 + $0x134] sm:$0xf]  ;;  %v2010_v28 = vld [vmem:[#allocation14 + $0x2f8] sm:$0xf0] }
  0x5c   :  { %1065 = vmatpush.bf16.msra.mxu3 %v1885_v26  ;;  %995 = vmatmul.bf16.vlgmr.msrb.gmra.mxu1 %v2723_v55  ;;  %v1869_v26 = vor.u32 %v2200_v56, %v1866_v23  ;;  %v1669_v18 = vor.u32 %v2150_v39, %v1666_v32  ;;  %v2196_v59 = vld [vmem:[#allocation14 + $0x1b4] sm:$0xf]  ;;  %v1850_v56 = vld [vmem:[#allocation14 + $0x1b8] sm:$0xf0]  ;;  %v1634_v48 = vld [vmem:[#allocation14 + $0x8] sm:$0xf0] }
  0x5d   :  { %1039 = vmatpush.bf16.msra.mxu1 %v1757_v62  ;;  %v1797_v62 = vor.u32 %v2182_v14, %v1794_v20  ;;  %v2164_v32 = vld [vmem:[#allocation14 + $0xb4] sm:$0xf]  ;;  %v2178_v14 = vld [vmem:[#allocation14 + $0x124] sm:$0xf] }
  0x5e   :  { %1027 = vmatpush.bf16.msra.mxu0 %v1685_v63  ;;  %v1741_v63 = vor.u32 %v2168_v43, %v1738_v24  ;;  %v1853_v43 = vor.u32 %v2196_v59, %v1850_v56  ;;  %v1722_v24 = vld [vmem:[#allocation14 + $0xb8] sm:$0xf0]  ;;  %v2142_v59 = vld [vmem:[#allocation14 + $0x4] sm:$0xf] }
  0x5f   :  { %1053 = vmatpush.bf16.msra.mxu2 %v1813_v36  ;;  %v2148_v36 = vld [vmem:[#allocation14 + $0x34] sm:$0xf] }
  0x60   :  { %1066 = vmatpush.bf16.msra.mxu3 %v1877_v10  ;;  %v1786_v10 = vld [vmem:[#allocation14 + $0x138] sm:$0xf0]  ;;  %v1661_v23 = vor.u32 %v2148_v36, %v1658_v5  ;;  %v2162_v36 = vld [vmem:[#allocation14 + $0xa4] sm:$0xf]  ;;  %v1714_v5 = vld [vmem:[#allocation14 + $0xa8] sm:$0xf0] }
  0x61   :  { %1040 = vmatpush.bf16.msra.mxu1 %v1749_v50  ;;  %v1789_v39 = vor.u32 %v2180_v52, %v1786_v10  ;;  %v2146_v50 = vld [vmem:[#allocation14 + $0x24] sm:$0xf]  ;;  %v2192_v52 = vld [vmem:[#allocation14 + $0x194] sm:$0xf]  ;;  %v1834_v10 = vld [vmem:[#allocation14 + $0x198] sm:$0xf0] }
  0x62   :  { %1028 = vmatpush.bf16.msra.mxu0 %v1677_v38  ;;  %v1733_v38 = vor.u32 %v2166_v60, %v1730_v15  ;;  %v1845_v60 = vor.u32 %v2194_v51, %v1842_v35  ;;  %v2176_v15 = vld [vmem:[#allocation14 + $0x114] sm:$0xf]  ;;  %v2074_v51 = vld [vmem:[#allocation14 + $0x378] sm:$0xf0]  ;;  %v1637_v35 = vor.u32 %v2142_v59, %v1634_v48  ;;  %v2250_v59 = vld [vmem:[#allocation14 + $0x364] sm:$0xf] }
  0x63   :  { %1054 = vmatpush.bf16.msra.mxu2 %v1805_v31  ;;  %v1650_v31 = vld [vmem:[#allocation14 + $0x28] sm:$0xf0] }
  0x64   :  { %1067 = vmatpush.bf16.msra.mxu3 %v1869_v26  ;;  %v1778_v26 = vld [vmem:[#allocation14 + $0x128] sm:$0xf0]  ;;  %v1653_v20 = vor.u32 %v2146_v50, %v1650_v31  ;;  %v1706_v50 = vld [vmem:[#allocation14 + $0x98] sm:$0xf0]  ;;  %v2174_v31 = vld [vmem:[#allocation14 + $0x104] sm:$0xf] }
  0x65   :  { %1041 = vmatpush.bf16.msra.mxu1 %v1741_v63  ;;  %v1781_v63 = vor.u32 %v2178_v14, %v1778_v26  ;;  %v1946_v14 = vld [vmem:[#allocation14 + $0x278] sm:$0xf0]  ;;  %v2252_v26 = vld [vmem:[#allocation14 + $0x374] sm:$0xf] }
  0x66   :  { %1029 = vmatpush.bf16.msra.mxu0 %v1669_v18  ;;  %v1725_v18 = vor.u32 %v2164_v32, %v1722_v24  ;;  %v1762_v32 = vld [vmem:[#allocation14 + $0x108] sm:$0xf0]  ;;  %v2220_v24 = vld [vmem:[#allocation14 + $0x274] sm:$0xf] }
  0x67   :  { %1055 = vmatpush.bf16.msra.mxu2 %v1797_v62  ;;  %v1642_v62 = vld [vmem:[#allocation14 + $0x18] sm:$0xf0] }
  0x68   :  { %1068 = vmatpush.bf16.msra.mxu3 %v1861_v47  ;;  %v1770_v47 = vld [vmem:[#allocation14 + $0x118] sm:$0xf0]  ;;  %v1645_v56 = vor.u32 %v2144_v4, %v1642_v62  ;;  %v1765_v62 = vor.u32 %v2174_v31, %v1762_v32  ;;  %v2013_v31 = vor.u32 %v2236_v44, %v2010_v28  ;;  %v2216_v32 = vld [vmem:[#allocation14 + $0x254] sm:$0xf] }
  0x69   :  { %1042 = vmatpush.bf16.msra.mxu1 %v1733_v38  ;;  %v1717_v38 = vor.u32 %v2162_v36, %v1714_v5  ;;  %v1949_v36 = vor.u32 %v2220_v24, %v1946_v14  ;;  %v2077_v5 = vor.u32 %v2252_v26, %v2074_v51  ;;  %v2002_v14 = vld [vmem:[#allocation14 + $0x2e8] sm:$0xf0]  ;;  %v2248_v51 = vld [vmem:[#allocation14 + $0x354] sm:$0xf] }
  0x6a   :  { %1030 = vmatpush.bf16.msra.mxu0 %v1661_v23  ;;  %v2160_v23 = vld [vmem:[#allocation14 + $0x94] sm:$0xf] }
  0x6b   :  { %1056 = vmatpush.bf16.msra.mxu2 %v1789_v39  ;;  %v1773_v39 = vor.u32 %v2176_v15, %v1770_v47  ;;  %v1709_v4 = vor.u32 %v2160_v23, %v1706_v50  ;;  %v2158_v15 = vld [vmem:[#allocation14 + $0x84] sm:$0xf]  ;;  %v1698_v47 = vld [vmem:[#allocation14 + $0x88] sm:$0xf0] }
  0x6c   :  { %1069 = vmatpush.bf16.msra.mxu3 %v1853_v43  ;;  %v1837_v43 = vor.u32 %v2192_v52, %v1834_v10  ;;  %v1938_v10 = vld [vmem:[#allocation14 + $0x268] sm:$0xf0]  ;;  %v1701_v23 = vor.u32 %v2158_v15, %v1698_v47  ;;  %v2266_v50 = vld [vmem:[#allocation14 + $0x3e4] sm:$0xf] }
  0x6d   :  { %1043 = vmatpush.bf16.msra.mxu1 %v1725_v18  ;;  %v2268_v18 = vld [vmem:[#allocation14 + $0x3f4] sm:$0xf]  ;;  %v2246_v15 = vld [vmem:[#allocation14 + $0x344] sm:$0xf]  ;;  %v2050_v47 = vld [vmem:[#allocation14 + $0x348] sm:$0xf0] }
  0x6e   :  { %1031 = vmatpush.bf16.msra.mxu0 %v1653_v20  ;;  %v1826_v20 = vld [vmem:[#allocation14 + $0x188] sm:$0xf0] }
  0x6f   :  { %1057 = vmatpush.bf16.msra.mxu2 %v1781_v63  ;;  %v2138_v63 = vld [vmem:[#allocation14 + $0x3f8] sm:$0xf0]  ;;  %v1829_v52 = vor.u32 %v2190_v49, %v1826_v20  ;;  %v2264_v20 = vld [vmem:[#allocation14 + $0x3d4] sm:$0xf] }
  0x70   :  { %1070 = vmatpush.bf16.msra.mxu3 %v1845_v60  ;;  %v2218_v60 = vld [vmem:[#allocation14 + $0x264] sm:$0xf]  ;;  %v2141_v48 = vor.u32 %v2268_v18, %v2138_v63  ;;  %v1930_v49 = vld [vmem:[#allocation14 + $0x258] sm:$0xf0]  ;;  %v1922_v63 = vld [vmem:[#allocation14 + $0x248] sm:$0xf0] }
  0x71   :  { %1044 = vmatpush.bf16.msra.mxu1 %v1717_v38  ;;  %v2130_v38 = vld [vmem:[#allocation14 + $0x3e8] sm:$0xf0]  ;;  %v1933_v28 = vor.u32 %v2216_v32, %v1930_v49  ;;  %v2106_v32 = vld [vmem:[#allocation14 + $0x3b8] sm:$0xf0]  ;;  %v2210_v49 = vld [vmem:[#allocation14 + $0x224] sm:$0xf] }
  0x72   :  { %1032 = vmatpush.bf16.msra.mxu0 %v1645_v56  ;;  %v2066_v56 = vld [vmem:[#allocation14 + $0x368] sm:$0xf0]  ;;  %v2133_v26 = vor.u32 %v2266_v50, %v2130_v38  ;;  %v2244_v38 = vld [vmem:[#allocation14 + $0x334] sm:$0xf] }
  0x73   :  { %1058 = vmatpush.bf16.msra.mxu2 %v1773_v39  ;;  %v1941_v39 = vor.u32 %v2218_v60, %v1938_v10  ;;  %v2069_v24 = vor.u32 %v2250_v59, %v2066_v56  ;;  %v2114_v60 = vld [vmem:[#allocation14 + $0x3c8] sm:$0xf0]  ;;  %v2053_v59 = vor.u32 %v2246_v15, %v2050_v47  ;;  %v1914_v56 = vld [vmem:[#allocation14 + $0x238] sm:$0xf0] }
  0x74   :  { %1071 = vmatpush.bf16.msra.mxu3 %v1837_v43  ;;  %v2234_v43 = vld [vmem:[#allocation14 + $0x2e4] sm:$0xf]  ;;  %v1986_v50 = vld [vmem:[#allocation14 + $0x2c8] sm:$0xf0] }
  0x75   :  { %1045 = vmatpush.bf16.msra.mxu1 %v1709_v4  ;;  %v2122_v4 = vld [vmem:[#allocation14 + $0x3d8] sm:$0xf0]  ;;  %v2005_v44 = vor.u32 %v2234_v43, %v2002_v14  ;;  %v1906_v14 = vld [vmem:[#allocation14 + $0x228] sm:$0xf0] }
  0x76   :  { %1033 = vmatpush.bf16.msra.mxu0 %v1637_v35  ;;  %v2058_v35 = vld [vmem:[#allocation14 + $0x358] sm:$0xf0]  ;;  %v1970_v15 = vld [vmem:[#allocation14 + $0x2a8] sm:$0xf0] }
  0x77   :  { %1059 = vmatpush.bf16.msra.mxu2 %v1765_v62  ;;  %v2214_v62 = vld [vmem:[#allocation14 + $0x244] sm:$0xf]  ;;  %v2061_v18 = vor.u32 %v2248_v51, %v2058_v35  ;;  %v1978_v51 = vld [vmem:[#allocation14 + $0x2b8] sm:$0xf0] }
  0x78   :  { %1072 = vmatpush.bf16.msra.mxu3 %v1829_v52  ;;  %v1925_v52 = vor.u32 %v2214_v62, %v1922_v63  ;;  %v1909_v62 = vor.u32 %v2210_v49, %v1906_v14  ;;  %v2208_v63 = vld [vmem:[#allocation14 + $0x214] sm:$0xf] }
  0x79   :  { %1034 = vmatmul.bf16.vlgmr.msra.gmra.mxu0 %v2637_v61  ;;  %1046 = vmatpush.bf16.msra.mxu1 %v1701_v23  ;;  %v2125_v61 = vor.u32 %v2264_v20, %v2122_v4  ;;  %v2230_v23 = vld [vmem:[#allocation14 + $0x2c4] sm:$0xf]  ;;  %v2034_v4 = vld [vmem:[#allocation14 + $0x328] sm:$0xf0] }
  0x7a   :  { %1078 = vmatpush.bf16.msrb.mxu0 %v1949_v36  ;;  %1060 = vmatmul.bf16.vlgmr.msra.gmra.mxu2 %v2626_v37  ;;  %v2232_v36 = vld [vmem:[#allocation14 + $0x2d4] sm:$0xf]  ;;  %v2262_v37 = vld [vmem:[#allocation14 + $0x3c4] sm:$0xf] }
  0x7b   :  { %1104 = vmatpush.bf16.msrb.mxu2 %v2077_v5  ;;  %v1994_v5 = vld [vmem:[#allocation14 + $0x2d8] sm:$0xf0]  ;;  %1073 = vmatmul.bf16.vlgmr.msra.gmra.mxu3 %v2628_v40  ;;  %v2117_v40 = vor.u32 %v2262_v37, %v2114_v60  ;;  %v2242_v20 = vld [vmem:[#allocation14 + $0x324] sm:$0xf]  ;;  %v2240_v37 = vld [vmem:[#allocation14 + $0x314] sm:$0xf] }
  0x7c   :  { %1117 = vmatpush.bf16.msrb.mxu3 %v2141_v48  ;;  %1047 = vmatmul.bf16.vlgmr.msra.gmra.mxu1 %v2643_v11  ;;  %v1997_v10 = vor.u32 %v2232_v36, %v1994_v5  ;;  %v2212_v48 = vld [vmem:[#allocation14 + $0x234] sm:$0xf]  ;;  %v2037_v36 = vor.u32 %v2242_v20, %v2034_v4  ;;  %v1898_v5 = vld [vmem:[#allocation14 + $0x218] sm:$0xf0]  ;;  %v3029_v4 = vld [vmem:[#allocation23_spill] sm:$0xff] }
  0x7d   :  { %1091 = vmatpush.bf16.msrb.mxu1 %v2013_v31  ;;  %v2260_v31 = vld [vmem:[#allocation14 + $0x3b4] sm:$0xf]  ;;  %v1917_v11 = vor.u32 %v2212_v48, %v1914_v56  ;;  %v2026_v60 = vld [vmem:[#allocation14 + $0x318] sm:$0xf0]  ;;  %v1901_v48 = vor.u32 %v2208_v63, %v1898_v5  ;;  %v2206_v56 = vld [vmem:[#allocation14 + $0x204] sm:$0xf] }
  0x7e   :  { %1079 = vmatpush.bf16.msrb.mxu0 %v1941_v39  ;;  %v2042_v39 = vld [vmem:[#allocation14 + $0x338] sm:$0xf0]  ;;  %v2109_v35 = vor.u32 %v2260_v31, %v2106_v32  ;;  %v2238_v31 = vld [vmem:[#allocation14 + $0x304] sm:$0xf]  ;;  %v2018_v32 = vld [vmem:[#allocation14 + $0x308] sm:$0xf0] }
  0x7f   :  { %1105 = vmatpush.bf16.msrb.mxu2 %v2069_v24  ;;  %v1989_v24 = vor.u32 %v2230_v23, %v1986_v50  ;;  %v2045_v43 = vor.u32 %v2244_v38, %v2042_v39  ;;  %v2029_v23 = vor.u32 %v2240_v37, %v2026_v60  ;;  %v1890_v50 = vld [vmem:[#allocation14 + $0x208] sm:$0xf0]  ;;  %v1962_v38 = vld [vmem:[#allocation14 + $0x298] sm:$0xf0]  ;;  %v2021_v14 = vor.u32 %v2238_v31, %v2018_v32  ;;  %v3031_v63 = vld [vmem:[#allocation24_spill] sm:$0xff] }
  0x80   :  { %1118 = vmatpush.bf16.msrb.mxu3 %v2133_v26  ;;  %v2228_v26 = vld [vmem:[#allocation14 + $0x2b4] sm:$0xf]  ;;  %v1893_v49 = vor.u32 %v2206_v56, %v1890_v50  ;;  %v3032_v5 = vld [vmem:[#allocation26_spill] sm:$0xff]  ;;  %v3042_v50 = vld [vmem:[#allocation37_spill] sm:$0xff] }
  0x81   :  { %1092 = vmatpush.bf16.msrb.mxu1 %v2005_v44  ;;  %v2098_v44 = vld [vmem:[#allocation14 + $0x3a8] sm:$0xf0]  ;;  %v3036_v60 = vld [vmem:[#allocation30_spill] sm:$0xff]  ;;  %v3046_v31 = vld [vmem:[#allocation41_spill] sm:$0xff] }
  0x82   :  { %1080 = vmatpush.bf16.msrb.mxu0 %v1933_v28  ;;  %v2258_v28 = vld [vmem:[#allocation14 + $0x3a4] sm:$0xf]  ;;  %v3047_v32 = vld [vmem:[#allocation40_spill] sm:$0xff] }
  0x83   :  { %1106 = vmatpush.bf16.msrb.mxu2 %v2061_v18  ;;  %v1981_v18 = vor.u32 %v2228_v26, %v1978_v51  ;;  %v2101_v47 = vor.u32 %v2258_v28, %v2098_v44  ;;  %v2222_v26 = vld [vmem:[#allocation14 + $0x284] sm:$0xf]  ;;  %v1954_v51 = vld [vmem:[#allocation14 + $0x288] sm:$0xf0] }
  0x84   :  { %1119 = vmatpush.bf16.msrb.mxu3 %v2125_v61  ;;  %v2226_v61 = vld [vmem:[#allocation14 + $0x2a4] sm:$0xf]  ;;  %v1957_v20 = vor.u32 %v2222_v26, %v1954_v51 }
  0x85   :  { %1093 = vmatpush.bf16.msrb.mxu1 %v1997_v10  ;;  %v2090_v10 = vld [vmem:[#allocation14 + $0x398] sm:$0xf0]  ;;  %v3040_v56 = vld [vmem:[#allocation34_spill] sm:$0xff] }
  0x86   :  { %1081 = vmatpush.bf16.msrb.mxu0 %v1925_v52  ;;  %v2256_v52 = vld [vmem:[#allocation14 + $0x394] sm:$0xf]  ;;  %v3052_v51 = vld [vmem:[#allocation46_spill] sm:$0xff] }
  0x87   :  { %1107 = vmatpush.bf16.msrb.mxu2 %v2053_v59  ;;  %v1973_v59 = vor.u32 %v2226_v61, %v1970_v15  ;;  %v2093_v39 = vor.u32 %v2256_v52, %v2090_v10  ;;  %v3033_v61 = vld [vmem:[#allocation27_spill] sm:$0xff]  ;;  %v3034_v15 = vld [vmem:[#allocation28_spill] sm:$0xff] }
  0x88   :  { %1120 = vmatpush.bf16.msrb.mxu3 %v2117_v40  ;;  %v2224_v40 = vld [vmem:[#allocation14 + $0x294] sm:$0xf]  ;;  %v3037_v10 = vld [vmem:[#allocation31_spill] sm:$0xff] }
  0x89   :  { %1094 = vmatpush.bf16.msrb.mxu1 %v1989_v24  ;;  %v2082_v24 = vld [vmem:[#allocation14 + $0x388] sm:$0xf0] }
  0x8a   :  { %1082 = vmatpush.bf16.msrb.mxu0 %v1917_v11  ;;  %v2254_v11 = vld [vmem:[#allocation14 + $0x384] sm:$0xf] }
  0x8b   :  { %1108 = vmatpush.bf16.msrb.mxu2 %v2045_v43  ;;  %v1965_v43 = vor.u32 %v2224_v40, %v1962_v38  ;;  %v3043_v40 = vld [vmem:[#allocation36_spill] sm:$0xff]  ;;  %v3044_v38 = vld [vmem:[#allocation38_spill] sm:$0xff] }
  0x8c   :  { %1121 = vmatpush.bf16.msrb.mxu3 %v2109_v35  ;;  %v2085_v35 = vor.u32 %v2254_v11, %v2082_v24  ;;  %v3048_v11 = vld [vmem:[#allocation42_spill] sm:$0xff]  ;;  %v3049_v24 = vld [vmem:[#allocation43_spill] sm:$0xff] }
  0x8d   :  { %1095 = vmatpush.bf16.msrb.mxu1 %v1981_v18  ;;  %v3030_v18 = vld [vmem:[#allocation25_spill] sm:$0xff] }
  0x8e   :  { %1083 = vmatpush.bf16.msrb.mxu0 %v1909_v62 }
  0x8f   :  { %1109 = vmatpush.bf16.msrb.mxu2 %v2037_v36 }
  0x90   :  { %1122 = vmatpush.bf16.msrb.mxu3 %v2101_v47  ;;  %v3035_v47 = vld [vmem:[#allocation29_spill] sm:$0xff] }
  0x91   :  { %1096 = vmatpush.bf16.msrb.mxu1 %v1973_v59  ;;  %v3039_v59 = vld [vmem:[#allocation32_spill] sm:$0xff] }
  0x92   :  { %1084 = vmatpush.bf16.msrb.mxu0 %v1901_v48  ;;  %v3038_v48 = vld [vmem:[#allocation33_spill] sm:$0xff] }
  0x93   :  { %1110 = vmatpush.bf16.msrb.mxu2 %v2029_v23  ;;  %v3041_v23 = vld [vmem:[#allocation35_spill] sm:$0xff] }
  0x94   :  { %1123 = vmatpush.bf16.msrb.mxu3 %v2093_v39  ;;  %v3045_v39 = vld [vmem:[#allocation39_spill] sm:$0xff] }
  0x95   :  { %1097 = vmatpush.bf16.msrb.mxu1 %v1965_v43  ;;  %v3050_v43 = vld [vmem:[#allocation45_spill] sm:$0xff] }
  0x96   :  { %1085 = vmatpush.bf16.msrb.mxu0 %v1893_v49 }
  0x97   :  { %1111 = vmatpush.bf16.msrb.mxu2 %v2021_v14  ;;  %v3051_v14 = vld [vmem:[#allocation44_spill] sm:$0xff] }
  0x98   :  { %1124 = vmatpush.bf16.msrb.mxu3 %v2085_v35 }
  0x99   :  { %1086 = vmatmul.bf16.vlgmr.msrb.gmra.mxu0 %v2716_v13  ;;  %1098 = vmatpush.bf16.msrb.mxu1 %v1957_v20  ;;  %v1136_v13 = vld [vmem:[#allocation12 + $0x8] sm:$0xff] }
  0x9a   :  { %1167 = vmatpush.bf16.msra.mxu0 %v2513_v3  ;;  %1112 = vmatmul.bf16.vlgmr.msrb.gmra.mxu2 %v2714_v0  ;;  %v1135_v0 = vld [vmem:[#allocation12] sm:$0xff]  ;;  %v1146_v28 = vunpack.c.h.b16 %v1136_v13  ;;  %v3053_v20 = vld [vmem:[#allocation47_spill] sm:$0xff] }
  0x9b   :  { %1193 = vmatpush.bf16.msra.mxu2 %v2515_v7  ;;  %1125 = vmatmul.bf16.vlgmr.msrb.gmra.mxu3 %v2719_v30  ;;  %v1143_v30 = vunpack.c.l.b16 %v1135_v0  ;;  %v1144_v62 = vunpack.c.h.b16 %v1135_v0 }
  0x9c   :  { %1206 = vmatpush.bf16.msra.mxu3 %v2517_v8  ;;  %1099 = vmatmul.bf16.vlgmr.msrb.gmra.mxu1 %v2723_v55  ;;  %v1145_v55 = vunpack.c.l.b16 %v1136_v13  ;;  %v1154_v37 = vpack.c.b16 %v1146_v28, %v1146_v28  ;;  %v3055_v28 = vld [vmem:[#allocation48_spill] sm:$0xff] }
  0x9d   :  { %1180 = vmatpush.bf16.msra.mxu1 %v2524_v16  ;;  %v1151_v44 = vpack.c.b16 %v1143_v30, %v1143_v30  ;;  %v1152_v52 = vpack.c.b16 %v1144_v62, %v1144_v62  ;;  %v3056_v62 = vld [vmem:[#allocation50_spill] sm:$0xff] }
  0x9e   :  { %1168 = vmatpush.bf16.msra.mxu0 %v2520_v12  ;;  %v1153_v36 = vpack.c.b16 %v1145_v55, %v1145_v55  ;;  %v3054_v55 = vld [vmem:[#allocation49_spill] sm:$0xff] }
  0x9f   :  { %1194 = vmatpush.bf16.msra.mxu2 %v2526_v17 }
  0xa0   :  { %1207 = vmatpush.bf16.msra.mxu3 %v2528_v21 }
  0xa1   :  { %1181 = vmatpush.bf16.msra.mxu1 %v2531_v25 }
  0xa2   :  { %1169 = vmatpush.bf16.msra.mxu0 %v2534_v29 }
  0xa3   :  { %1195 = vmatpush.bf16.msra.mxu2 %v2538_v33 }
  0xa4   :  { %1208 = vmatpush.bf16.msra.mxu3 %v2540_v34 }
  0xa5   :  { %1182 = vmatpush.bf16.msra.mxu1 %v2543_v41 }
  0xa6   :  { %1170 = vmatpush.bf16.msra.mxu0 %v2546_v42 }
  0xa7   :  { %1196 = vmatpush.bf16.msra.mxu2 %v2550_v45 }
  0xa8   :  { %1209 = vmatpush.bf16.msra.mxu3 %v2552_v46 }
  0xa9   :  { %1183 = vmatpush.bf16.msra.mxu1 %v2555_v53 }
  0xaa   :  { %1171 = vmatpush.bf16.msra.mxu0 %v2558_v54 }
  0xab   :  { %1197 = vmatpush.bf16.msra.mxu2 %v2562_v57 }
  0xac   :  { %1210 = vmatpush.bf16.msra.mxu3 %v2564_v58 }
  0xad   :  { %1184 = vmatpush.bf16.msra.mxu1 %v2567_v1 }
  0xae   :  { %1172 = vmatpush.bf16.msra.mxu0 %v2570_v2 }
  0xaf   :  { %1198 = vmatpush.bf16.msra.mxu2 %v2574_v6 }
  0xb0   :  { %1211 = vmatpush.bf16.msra.mxu3 %v2576_v9 }
  0xb1   :  { %1185 = vmatpush.bf16.msra.mxu1 %v2579_v19 }
  0xb2   :  { %1173 = vmatpush.bf16.msra.mxu0 %v2582_v22 }
  0xb3   :  { %1199 = vmatpush.bf16.msra.mxu2 %v2586_v27 }
  0xb4   :  { %1212 = vmatpush.bf16.msra.mxu3 %v3029_v4 }
  0xb5   :  { %1186 = vmatpush.bf16.msra.mxu1 %v3031_v63 }
  0xb6   :  { %1174 = vmatpush.bf16.msra.mxu0 %v3030_v18  ;;  %v931_v49 = vpop.f32.mrf.mxu0 }
  0xb7   :  { %1200 = vmatpush.bf16.msra.mxu2 %v3032_v5 }
  0xb8   :  { %1213 = vmatpush.bf16.msra.mxu3 %v3035_v47 }
  0xb9   :  { %1175 = vmatmul.bf16.vlgmr.msra.gmra.mxu0 %v1151_v44  ;;  %1187 = vmatpush.bf16.msra.mxu1 %v3037_v10  ;;  %v944_v26 = vpop.f32.mrf.mxu1  ;;  %v1137_v44 = vld [vmem:[#allocation12 + $0x10] sm:$0xff] }
  0xba   :  { %1219 = vmatpush.bf16.msrb.mxu0 %v3033_v61  ;;  %1201 = vmatmul.bf16.vlgmr.msra.gmra.mxu2 %v1153_v36  ;;  %v945_v35 = vadd.f32 %v944_v26, %v931_v49  ;;  %v1138_v36 = vld [vmem:[#allocation12 + $0x18] sm:$0xff] }
  0xbb   :  { %1245 = vmatpush.bf16.msrb.mxu2 %v3034_v15  ;;  %1214 = vmatmul.bf16.vlgmr.msra.gmra.mxu3 %v1154_v37  ;;  %v3059_v49 = vld [vmem:[#allocation52_spill] sm:$0xff]  ;;  %v1149_v26 = vunpack.c.l.b16 %v1138_v36 }
  0xbc   :  { %1258 = vmatpush.bf16.msrb.mxu3 %v3036_v60  ;;  %1188 = vmatmul.bf16.vlgmr.msra.gmra.mxu1 %v1152_v52  ;;  %v3057_v52 = vld [vmem:[#allocation51_spill] sm:$0xff] }
  0xbd   :  { %1232 = vmatpush.bf16.msrb.mxu1 %v3039_v59  ;;  %v957_v0 = vpop.f32.mrf.mxu2 }
  0xbe   :  { %1220 = vmatpush.bf16.msrb.mxu0 %v3038_v48  ;;  %v958_v13 = vadd.f32 %v957_v0, %v945_v35  ;;  %v970_v30 = vpop.f32.mrf.mxu3  ;;  %v3060_v0 = vld [vmem:[#allocation54_spill] sm:$0xff] }
  0xbf   :  { %1246 = vmatpush.bf16.msrb.mxu2 %v3040_v56 }
  0xc0   :  { %1259 = vmatpush.bf16.msrb.mxu3 %v3041_v23  ;;  %v971_v37 = vadd.f32 %v970_v30, %v958_v13  ;;  %v3062_v13 = vld [vmem:[#allocation57_spill] sm:$0xff]  ;;  %v3063_v30 = vld [vmem:[#allocation56_spill] sm:$0xff] }
  0xc1   :  { %1233 = vmatpush.bf16.msrb.mxu1 %v3043_v40  ;;  %v946_v35 = vpop.f32.mrf.mxu1 }
  0xc2   :  { %1221 = vmatpush.bf16.msrb.mxu0 %v3042_v50  ;;  %v3065_v35 = vld [vmem:[#allocation59_spill] sm:$0xff] }
  0xc3   :  { %1247 = vmatpush.bf16.msrb.mxu2 %v3044_v38 }
  0xc4   :  { %1260 = vmatpush.bf16.msrb.mxu3 %v3045_v39 }
  0xc5   :  { %1234 = vmatpush.bf16.msrb.mxu1 %v3047_v32 }
  0xc6   :  { %1222 = vmatpush.bf16.msrb.mxu0 %v3046_v31 }
  0xc7   :  { %1248 = vmatpush.bf16.msrb.mxu2 %v3048_v11  ;;  %v972_v11 = vpop.f32.mrf.mxu3 }
  0xc8   :  { %1261 = vmatpush.bf16.msrb.mxu3 %v3049_v24  ;;  %v3066_v11 = vld [vmem:[#allocation60_spill] sm:$0xff] }
  0xc9   :  { %1235 = vmatpush.bf16.msrb.mxu1 %v3051_v14  ;;  %v933_v14 = vpop.f32.mrf.mxu0 }
  0xca   :  { %1223 = vmatpush.bf16.msrb.mxu0 %v3050_v43  ;;  %v1147_v43 = vunpack.c.l.b16 %v1137_v44  ;;  %v1157_v14 = vpack.c.b16 %v1149_v26, %v1149_v26 }
  0xcb   :  { %1249 = vmatpush.bf16.msrb.mxu2 %v3052_v51  ;;  %v3058_v51 = vld [vmem:[#allocation53_spill] sm:$0xff] }
  0xcc   :  { %1262 = vmatpush.bf16.msrb.mxu3 %v3053_v20  ;;  %v3061_v20 = vld [vmem:[#allocation55_spill] sm:$0xff]  ;;  %v1155_v24 = vpack.c.b16 %v1147_v43, %v1147_v43 }
  0xcd   :  { %1236 = vmatpush.bf16.msrb.mxu1 %v3055_v28  ;;  %v959_v28 = vpop.f32.mrf.mxu2 }
  0xce   :  { %1224 = vmatpush.bf16.msrb.mxu0 %v3054_v55  ;;  %v1150_v55 = vunpack.c.h.b16 %v1138_v36 }
  0xcf   :  { %1250 = vmatpush.bf16.msrb.mxu2 %v3056_v62  ;;  %v1148_v62 = vunpack.c.h.b16 %v1137_v44  ;;  %v1437_v44 = vld [vmem:[#allocation15 + $0x78] sm:$0xff] }
  0xd0   :  { %1263 = vmatpush.bf16.msrb.mxu3 %v3057_v52  ;;  %v3064_v52 = vld [vmem:[#allocation58_spill] sm:$0xff] }
  0xd1   :  { %1237 = vmatpush.bf16.msrb.mxu1 %v3059_v49  ;;  %v1158_v49 = vpack.c.b16 %v1150_v55, %v1150_v55  ;;  %v1156_v43 = vpack.c.b16 %v1148_v62, %v1148_v62 }
  0xd2   :  { %1225 = vmatpush.bf16.msrb.mxu0 %v3058_v51 }
  0xd3   :  { %1251 = vmatpush.bf16.msrb.mxu2 %v3060_v0 }
  0xd4   :  { %1264 = vmatpush.bf16.msrb.mxu3 %v3061_v20 }
  0xd5   :  { %1238 = vmatpush.bf16.msrb.mxu1 %v3063_v30 }
  0xd6   :  { %1226 = vmatpush.bf16.msrb.mxu0 %v3062_v13 }
  0xd7   :  { %1252 = vmatpush.bf16.msrb.mxu2 %v3064_v52 }
  0xd8   :  { %1265 = vmatpush.bf16.msrb.mxu3 %v3065_v35 }
  0xd9   :  { %1227 = vmatmul.bf16.vlgmr.msrb.gmra.mxu0 %v1155_v24  ;;  %1239 = vmatpush.bf16.msrb.mxu1 %v3066_v11 }
  0xda   :  { %1307 = vmatpush.bf16.msra.mxu0 %v2513_v3  ;;  %1253 = vmatmul.bf16.vlgmr.msrb.gmra.mxu2 %v1157_v14  ;;  %v983_v3 = vpop.f32.mrf.mxu0 }
  0xdb   :  { %1333 = vmatpush.bf16.msra.mxu2 %v2515_v7  ;;  %1266 = vmatmul.bf16.vlgmr.msrb.gmra.mxu3 %v1158_v49  ;;  %v984_v7 = vadd.f32 %v983_v3, %v971_v37  ;;  %v1436_v49 = vld [vmem:[#allocation15 + $0x70] sm:$0xff]  ;;  %v1430_v3 = vld [vmem:[#allocation15 + $0x40] sm:$0xff] }
  0xdc   :  { %1346 = vmatpush.bf16.msra.mxu3 %v2517_v8  ;;  %1240 = vmatmul.bf16.vlgmr.msrb.gmra.mxu1 %v1156_v43  ;;  %v996_v8 = vpop.f32.mrf.mxu1 }
  0xdd   :  { %1320 = vmatpush.bf16.msra.mxu1 %v2524_v16  ;;  %v1009_v16 = vpop.f32.mrf.mxu2 }
  0xde   :  { %1308 = vmatpush.bf16.msra.mxu0 %v2520_v12  ;;  %v997_v12 = vadd.f32 %v996_v8, %v984_v7 }
  0xdf   :  { %1334 = vmatpush.bf16.msra.mxu2 %v2526_v17 }
  0xe0   :  { %1347 = vmatpush.bf16.msra.mxu3 %v2528_v21  ;;  %v1010_v17 = vadd.f32 %v1009_v16, %v997_v12  ;;  %v1022_v21 = vpop.f32.mrf.mxu3  ;;  %v1428_v12 = vld [vmem:[#allocation15 + $0x30] sm:$0xff] }
  0xe1   :  { %1321 = vmatpush.bf16.msra.mxu1 %v2531_v25 }
  0xe2   :  { %1309 = vmatpush.bf16.msra.mxu0 %v2534_v29  ;;  %v985_v25 = vpop.f32.mrf.mxu0  ;;  %v2820_v29 = vadd.f32 %v1022_v21, %v1010_v17  ;;  %v1427_v21 = vld [vmem:[#allocation15 + $0x28] sm:$0xff] }
  0xe3   :  { %1335 = vmatpush.bf16.msra.mxu2 %v2538_v33  ;;  %v1275_v33 = vld [vmem:[#allocation12 + $0x20] sm:$0xff] }
  0xe4   :  { %1348 = vmatpush.bf16.msra.mxu3 %v2540_v34  ;;  %v1276_v34 = vld [vmem:[#allocation12 + $0x28] sm:$0xff] }
  0xe5   :  { %1322 = vmatpush.bf16.msra.mxu1 %v2543_v41  ;;  %v998_v41 = vpop.f32.mrf.mxu1 }
  0xe6   :  { %1310 = vmatpush.bf16.msra.mxu0 %v2546_v42  ;;  %v1283_v42 = vunpack.c.l.b16 %v1275_v33 }
  0xe7   :  { %1336 = vmatpush.bf16.msra.mxu2 %v2550_v45  ;;  %v1285_v45 = vunpack.c.l.b16 %v1276_v34 }
  0xe8   :  { %1349 = vmatpush.bf16.msra.mxu3 %v2552_v46  ;;  %v1011_v46 = vpop.f32.mrf.mxu2 }
  0xe9   :  { %1323 = vmatpush.bf16.msra.mxu1 %v2555_v53  ;;  %v1024_v53 = vpop.f32.mrf.mxu3 }
  0xea   :  { %1311 = vmatpush.bf16.msra.mxu0 %v2558_v54  ;;  %v1291_v54 = vpack.c.b16 %v1283_v42, %v1283_v42  ;;  %v1426_v42 = vld [vmem:[#allocation15 + $0x20] sm:$0xff] }
  0xeb   :  { %1337 = vmatpush.bf16.msra.mxu2 %v2562_v57  ;;  %v1286_v57 = vunpack.c.h.b16 %v1276_v34 }
  0xec   :  { %1350 = vmatpush.bf16.msra.mxu3 %v2564_v58  ;;  %v1293_v58 = vpack.c.b16 %v1285_v45, %v1285_v45  ;;  %v1425_v45 = vld [vmem:[#allocation15 + $0x18] sm:$0xff] }
  0xed   :  { %1324 = vmatpush.bf16.msra.mxu1 %v2567_v1  ;;  %v1284_v1 = vunpack.c.h.b16 %v1275_v33  ;;  %v2287_v33 = vld [vmem:[#allocation17] ss:$0 sm:$0xff] }
  0xee   :  { %1312 = vmatpush.bf16.msra.mxu0 %v2570_v2  ;;  %v1294_v2 = vpack.c.b16 %v1286_v57, %v1286_v57  ;;  %v2870_v53 = vadd.f32 %v2287_v33, %v2820_v29 }
  0xef   :  { %1338 = vmatpush.bf16.msra.mxu2 %v2574_v6  ;;  %v1292_v6 = vpack.c.b16 %v1284_v1, %v1284_v1 }
  0xf0   :  { %1351 = vmatpush.bf16.msra.mxu3 %v2576_v9  ;;  %v1445_v1 = vmul.f32 0.2, %v2870_v53  ;;  %vm1444_vm0 = vcmp.gt.f32.partialorder %v2870_v53, 0.0 }
  0xf1   :  { %1325 = vmatpush.bf16.msra.mxu1 %v2579_v19  ;;  %v3067_v19 = vld [vmem:[#allocation42_spill] sm:$0xff] }
  0xf2   :  { %1313 = vmatpush.bf16.msra.mxu0 %v2582_v22  ;;  %v3068_v22 = vld [vmem:[#allocation43_spill] sm:$0xff]  ;;  %v1446_v29 = vsel %vm1444_vm0, %v2870_v53, %v1445_v1 }
  0xf3   :  { %1339 = vmatpush.bf16.msra.mxu2 %v2586_v27 }
  0xf4   :  { %1352 = vmatpush.bf16.msra.mxu3 %v3029_v4 }
  0xf5   :  { %1326 = vmatpush.bf16.msra.mxu1 %v3031_v63  ;;  %v3070_v63 = vld [vmem:[#allocation44_spill] sm:$0xff] }
  0xf6   :  { %1314 = vmatpush.bf16.msra.mxu0 %v3030_v18  ;;  %v1035_v9 = vpop.f32.mrf.mxu0  ;;  %v3069_v18 = vld [vmem:[#allocation45_spill] sm:$0xff] }
  0xf7   :  { %1340 = vmatpush.bf16.msra.mxu2 %v3032_v5 }
  0xf8   :  { %1353 = vmatpush.bf16.msra.mxu3 %v3035_v47 }
  0xf9   :  { %1315 = vmatmul.bf16.vlgmr.msra.gmra.mxu0 %v1291_v54  ;;  %1327 = vmatpush.bf16.msra.mxu1 %v3037_v10  ;;  %v1048_v27 = vpop.f32.mrf.mxu1  ;;  %v1424_v54 = vld [vmem:[#allocation15 + $0x10] sm:$0xff] }
  0xfa   :  { %1359 = vmatpush.bf16.msrb.mxu0 %v3033_v61  ;;  %1341 = vmatmul.bf16.vlgmr.msra.gmra.mxu2 %v1293_v58  ;;  %v1049_v4 = vadd.f32 %v1048_v27, %v1035_v9  ;;  %v3071_v61 = vld [vmem:[#allocation46_spill] sm:$0xff] }
  0xfb   :  { %1385 = vmatpush.bf16.msrb.mxu2 %v3034_v15  ;;  %1354 = vmatmul.bf16.vlgmr.msra.gmra.mxu3 %v1294_v2  ;;  %v1423_v58 = vld [vmem:[#allocation15 + $0x8] sm:$0xff] }
  0xfc   :  { %1398 = vmatpush.bf16.msrb.mxu3 %v3036_v60  ;;  %1328 = vmatmul.bf16.vlgmr.msra.gmra.mxu1 %v1292_v6  ;;  %v3072_v60 = vld [vmem:[#allocation47_spill] sm:$0xff]  ;;  %v1422_v6 = vld [vmem:[#allocation15] sm:$0xff] }
  0xfd   :  { %1372 = vmatpush.bf16.msrb.mxu1 %v3039_v59  ;;  %v1061_v5 = vpop.f32.mrf.mxu2  ;;  %v3074_v59 = vld [vmem:[#allocation48_spill] sm:$0xff] }
  0xfe   :  { %1360 = vmatpush.bf16.msrb.mxu0 %v3038_v48  ;;  %v1062_v15 = vadd.f32 %v1061_v5, %v1049_v4  ;;  %v1037_v47 = vpop.f32.mrf.mxu0  ;;  %v1074_v10 = vpop.f32.mrf.mxu3  ;;  %v3073_v48 = vld [vmem:[#allocation49_spill] sm:$0xff] }
  0xff   :  { %1386 = vmatpush.bf16.msrb.mxu2 %v3040_v56 }
 0x100   :  { %1399 = vmatpush.bf16.msrb.mxu3 %v3041_v23  ;;  %v1075_v56 = vadd.f32 %v1074_v10, %v1062_v15  ;;  %v3075_v23 = vld [vmem:[#allocation50_spill] sm:$0xff] }
 0x101   :  { %1373 = vmatpush.bf16.msrb.mxu1 %v3043_v40  ;;  %v3076_v40 = vld [vmem:[#allocation51_spill] sm:$0xff] }
 0x102   :  { %1361 = vmatpush.bf16.msrb.mxu0 %v3042_v50  ;;  %v1278_v50 = vld [vmem:[#allocation12 + $0x38] sm:$0xff] }
 0x103   :  { %1387 = vmatpush.bf16.msrb.mxu2 %v3044_v38  ;;  %v1277_v38 = vld [vmem:[#allocation12 + $0x30] sm:$0xff]  ;;  %v1290_v28 = vunpack.c.h.b16 %v1278_v50 }
 0x104   :  { %1400 = vmatpush.bf16.msrb.mxu3 %v3045_v39  ;;  %v1050_v39 = vpop.f32.mrf.mxu1  ;;  %v1287_v55 = vunpack.c.l.b16 %v1277_v38  ;;  %v1288_v62 = vunpack.c.h.b16 %v1277_v38 }
 0x105   :  { %1374 = vmatpush.bf16.msrb.mxu1 %v3047_v32  ;;  %v1289_v32 = vunpack.c.l.b16 %v1278_v50  ;;  %v1063_v24 = vpop.f32.mrf.mxu2  ;;  %v1298_v26 = vpack.c.b16 %v1290_v28, %v1290_v28 }
 0x106   :  { %1362 = vmatpush.bf16.msrb.mxu0 %v3046_v31  ;;  %v3077_v31 = vld [vmem:[#allocation52_spill] sm:$0xff]  ;;  %v1076_v36 = vpop.f32.mrf.mxu3  ;;  %v1296_v14 = vpack.c.b16 %v1288_v62, %v1288_v62 }
 0x107   :  { %1388 = vmatpush.bf16.msrb.mxu2 %v3067_v19  ;;  %v1297_v37 = vpack.c.b16 %v1289_v32, %v1289_v32  ;;  %v1517_v36 = vmul.f32 2.0, %v1446_v29 }
 0x108   :  { %1401 = vmatpush.bf16.msrb.mxu3 %v3068_v22 }
 0x109   :  { %1375 = vmatpush.bf16.msrb.mxu1 %v3070_v63 }
 0x10a   :  { %1363 = vmatpush.bf16.msrb.mxu0 %v3069_v18 }
 0x10b   :  { %1389 = vmatpush.bf16.msrb.mxu2 %v3071_v61 }
 0x10c   :  { %1402 = vmatpush.bf16.msrb.mxu3 %v3072_v60 }
 0x10d   :  { %1376 = vmatpush.bf16.msrb.mxu1 %v3074_v59 }
 0x10e   :  { %1364 = vmatpush.bf16.msrb.mxu0 %v3073_v48 }
 0x10f   :  { %1390 = vmatpush.bf16.msrb.mxu2 %v3075_v23 }
 0x110   :  { %1403 = vmatpush.bf16.msrb.mxu3 %v3076_v40 }
 0x111   :  { %1377 = vmatpush.bf16.msrb.mxu1 %v3077_v31 }
 0x112   :  { %1365 = vmatpush.bf16.msrb.mxu0 %v3058_v51  ;;  %v1295_v51 = vpack.c.b16 %v1287_v55, %v1287_v55 }
 0x113   :  { %1391 = vmatpush.bf16.msrb.mxu2 %v3060_v0  ;;  %v1435_v0 = vld [vmem:[#allocation15 + $0x68] sm:$0xff] }
 0x114   :  { %1404 = vmatpush.bf16.msrb.mxu3 %v3061_v20  ;;  %v1434_v20 = vld [vmem:[#allocation15 + $0x60] sm:$0xff] }
 0x115   :  { %1378 = vmatpush.bf16.msrb.mxu1 %v3063_v30  ;;  %v1431_v30 = vld [vmem:[#allocation15 + $0x48] sm:$0xff] }
 0x116   :  { %1366 = vmatpush.bf16.msrb.mxu0 %v3062_v13  ;;  %v1433_v13 = vld [vmem:[#allocation15 + $0x58] sm:$0xff] }
 0x117   :  { %1392 = vmatpush.bf16.msrb.mxu2 %v3064_v52  ;;  %v1432_v52 = vld [vmem:[#allocation15 + $0x50] sm:$0xff] }
 0x118   :  { %1405 = vmatpush.bf16.msrb.mxu3 %v3065_v35  ;;  %v1087_v35 = vpop.f32.mrf.mxu0 }
 0x119   :  { %1379 = vmatpush.bf16.msrb.mxu1 %v3066_v11  ;;  %1367 = vmatmul.bf16.vlgmr.msrb.gmra.mxu0 %v1295_v51  ;;  %v1088_v43 = vadd.f32 %v1087_v35, %v1075_v56  ;;  %v1429_v11 = vld [vmem:[#allocation15 + $0x38] sm:$0xff]  ;;  %v1100_v7 = vpop.f32.mrf.mxu1 }
 0x11a   :  { %1448 = vmatpush.msra.mxu0 %v1437_v44  ;;  %1393 = vmatmul.bf16.vlgmr.msrb.gmra.mxu2 %v1297_v37 }
 0x11b   :  { %1406 = vmatmul.bf16.vlgmr.msrb.gmra.mxu3 %v1298_v26  ;;  %v1101_v8 = vadd.f32 %v1100_v7, %v1088_v43 }
 0x11c   :  { %1449 = vmatpush.msra.mxu0 %v1436_v49  ;;  %1380 = vmatmul.bf16.vlgmr.msrb.gmra.mxu1 %v1296_v14 }
 0x11d   :  { %1535 = vmatpush.msra.mxu1 %v1437_v44  ;;  %v1113_v16 = vpop.f32.mrf.mxu2 }
 0x11e   :  { %1450 = vmatpush.msra.mxu0 %v1435_v0  ;;  %v1114_v17 = vadd.f32 %v1113_v16, %v1101_v8  ;;  %v1126_v34 = vpop.f32.mrf.mxu3 }
 0x11f   :  { %1536 = vmatpush.msra.mxu1 %v1436_v49 }
 0x120   :  { %1451 = vmatpush.msra.mxu0 %v1434_v20  ;;  %v1089_v25 = vpop.f32.mrf.mxu0  ;;  %v2867_v41 = vadd.f32 %v1126_v34, %v1114_v17 }
 0x121   :  { %1537 = vmatpush.msra.mxu1 %v1435_v0  ;;  %v1102_v46 = vpop.f32.mrf.mxu1 }
 0x122   :  { %1452 = vmatpush.msra.mxu0 %v1433_v13 }
 0x123   :  { %1538 = vmatpush.msra.mxu1 %v1434_v20 }
 0x124   :  { %1453 = vmatpush.msra.mxu0 %v1432_v52 }
 0x125   :  { %1539 = vmatpush.msra.mxu1 %v1433_v13  ;;  %v1115_v57 = vpop.f32.mrf.mxu2 }
 0x126   :  { %1454 = vmatpush.msra.mxu0 %v1431_v30  ;;  %v1128_v2 = vpop.f32.mrf.mxu3 }
 0x127   :  { %1540 = vmatpush.msra.mxu1 %v1432_v52 }
 0x128   :  { %1455 = vmatpush.msra.mxu0 %v1430_v3 }
 0x129   :  { %1541 = vmatpush.msra.mxu1 %v1431_v30 }
 0x12a   :  { %1456 = vmatpush.msra.mxu0 %v1429_v11 }
 0x12b   :  { %1542 = vmatpush.msra.mxu1 %v1430_v3 }
 0x12c   :  { %1457 = vmatpush.msra.mxu0 %v1428_v12 }
 0x12d   :  { %1543 = vmatpush.msra.mxu1 %v1429_v11 }
 0x12e   :  { %1458 = vmatpush.msra.mxu0 %v1427_v21 }
 0x12f   :  { %1544 = vmatpush.msra.mxu1 %v1428_v12 }
 0x130   :  { %1459 = vmatpush.msra.mxu0 %v1426_v42 }
 0x131   :  { %1545 = vmatpush.msra.mxu1 %v1427_v21 }
 0x132   :  { %1460 = vmatpush.msra.mxu0 %v1425_v45 }
 0x133   :  { %1546 = vmatpush.msra.mxu1 %v1426_v42 }
 0x134   :  { %1461 = vmatpush.msra.mxu0 %v1424_v54 }
 0x135   :  { %1547 = vmatpush.msra.mxu1 %v1425_v45 }
 0x136   :  { %1462 = vmatpush.msra.mxu0 %v1423_v58  ;;  %v1176_v9 = vpop.f32.mrf.mxu0 }
 0x137   :  { %1548 = vmatpush.msra.mxu1 %v1424_v54 }
 0x138   :  { %1463 = vmatpush.msra.mxu0 %v1422_v6 }
 0x139   :  { %1464 = vmatmul.f32.vlgmr.msra.gmra.mxu0 %v1446_v29  ;;  %1549 = vmatpush.msra.mxu1 %v1423_v58  ;;  %v1189_v19 = vpop.f32.mrf.mxu1 }
 0x13a   :  { %v1190_v22 = vadd.f32 %v1189_v19, %v1176_v9 }
 0x13b   :  { %1550 = vmatpush.msra.mxu1 %v1422_v6 }
 0x13d   :  { %v1202_v27 = vpop.f32.mrf.mxu2 }
 0x13e   :  { %v1203_v4 = vadd.f32 %v1202_v27, %v1190_v22  ;;  %v1178_v18 = vpop.f32.mrf.mxu0  ;;  %v1215_v63 = vpop.f32.mrf.mxu3 }
 0x13f   :  { %v2289_v18 = vld [vmem:[#allocation17 + $0x2] ss:$0 sm:$0xff] }
 0x140   :  { %v1216_v5 = vadd.f32 %v1215_v63, %v1203_v4  ;;  %v2288_v4 = vld [vmem:[#allocation17 + $0x1] ss:$0 sm:$0xff] }
 0x141   :  { %v1191_v61 = vpop.f32.mrf.mxu1 }
 0x142   :  { %v1471_v61 = vstv %s1470_s27 }
 0x145   :  { %v1204_v15 = vpop.f32.mrf.mxu2 }
 0x146   :  { %v1217_v47 = vpop.f32.mrf.mxu3 }
 0x156   :  { %v1228_v60 = vpop.f32.mrf.mxu0 }
 0x157   :  { %v1229_v10 = vadd.f32 %v1228_v60, %v1216_v5  ;;  %v1468_v5 = vstv %s2907_s0 }
 0x159   :  { %v1241_v48 = vpop.f32.mrf.mxu1 }
 0x15a   :  { %v1242_v59 = vadd.f32 %v1241_v48, %v1229_v10  ;;  %v2290_v10 = vld [vmem:[#allocation17 + $0x3] ss:$0 sm:$0xff] }
 0x15d   :  { %v1254_v56 = vpop.f32.mrf.mxu2 }
 0x15e   :  { %v1255_v23 = vadd.f32 %v1254_v56, %v1242_v59  ;;  %v1267_v50 = vpop.f32.mrf.mxu3  ;;  %v1230_v40 = vpop.f32.mrf.mxu0  ;;  %v1557_v56 = vstv %s1556_s12 }
 0x15f   :  { %v1478_v40 = vstv %s2908_s1 }
 0x160   :  { %v1268_v38 = vadd.f32 %v1267_v50, %v1255_v23 }
 0x161   :  { %v1243_v31 = vpop.f32.mrf.mxu1 }
 0x162   :  { %v1508_v39 = vmul.f32 0.1, %v1268_v38 }
 0x164   :  { %v1509_v32 = vadd.f32 %v1508_v39, %v2870_v53  ;;  %v1513_v24 = vsub.f32 %v2870_v53, %v1508_v39 }
 0x165   :  { %v1256_v55 = vpop.f32.mrf.mxu2 }
 0x166   :  { %vm1510_vm1 = vcmp.gt.f32.partialorder %v1509_v32, 0.0  ;;  %v1511_v28 = vmul.f32 0.2, %v1509_v32  ;;  %v1515_v44 = vmul.f32 0.2, %v1513_v24  ;;  %v1269_v62 = vpop.f32.mrf.mxu3  ;;  %vm1514_vm2 = vcmp.gt.f32.partialorder %v1513_v24, 0.0 }
 0x168   :  { %v1512_v37 = vsel %vm1510_vm1, %v1509_v32, %v1511_v28  ;;  %v1516_v51 = vsel %vm1514_vm2, %v1513_v24, %v1515_v44 }
 0x169   :  { %v1518_v49 = vsub.f32 %v1512_v37, %v1517_v36 }
 0x16b   :  { %v1519_v26 = vadd.f32 %v1518_v49, %v1516_v51 }
 0x176   :  { %v1316_v0 = vpop.f32.mrf.mxu0 }
 0x179   :  { %v1329_v14 = vpop.f32.mrf.mxu1 }
 0x17a   :  { %v1330_v3 = vadd.f32 %v1329_v14, %v1316_v0  ;;  %v1496_v0 = vlaneseq }
 0x17d   :  { %v1342_v20 = vpop.f32.mrf.mxu2 }
 0x17e   :  { %v1318_v13 = vpop.f32.mrf.mxu0  ;;  %v1355_v52 = vpop.f32.mrf.mxu3  ;;  %v1343_v11 = vadd.f32 %v1342_v20, %v1330_v3 }
 0x17f   :  { %v1497_v13 = vshrl.u32 %v1496_v0, 7 }
 0x180   :  { %v1356_v7 = vadd.f32 %v1355_v52, %v1343_v11 }
 0x181   :  { %v1331_v30 = vpop.f32.mrf.mxu1  ;;  %vm1501_vm7 = vcmp.lt.s32.totalorder %v1497_v13, 2 }
 0x185   :  { %v1344_v35 = vpop.f32.mrf.mxu2 }
 0x186   :  { %v1357_v43 = vpop.f32.mrf.mxu3 }
 0x196   :  { %v1368_v8 = vpop.f32.mrf.mxu0 }
 0x197   :  { %v1369_v12 = vadd.f32 %v1368_v8, %v1356_v7 }
 0x199   :  { %v1381_v16 = vpop.f32.mrf.mxu1 }
 0x19a   :  { %v1382_v17 = vadd.f32 %v1381_v16, %v1369_v12 }
 0x19d   :  { %v1394_v21 = vpop.f32.mrf.mxu2 }
 0x19e   :  { %v1395_v25 = vadd.f32 %v1394_v21, %v1382_v17  ;;  %v1407_v33 = vpop.f32.mrf.mxu3  ;;  %v1370_v42 = vpop.f32.mrf.mxu0 }
 0x1a0   :  { %v1408_v34 = vadd.f32 %v1407_v33, %v1395_v25 }
 0x1a1   :  { %v1383_v46 = vpop.f32.mrf.mxu1 }
 0x1a2   :  { %v1521_v45 = vmul.f32 0.1, %v1408_v34 }
 0x1a4   :  { %v1522_v54 = vadd.f32 %v1521_v45, %v2870_v53  ;;  %v1526_v57 = vsub.f32 %v2870_v53, %v1521_v45  ;;  %v1443_v53 = vadd.f32 %v2288_v4, %v2867_v41  ;;  %v2456_v41 = vmov 0.0  }
 0x1a5   :  { %v1396_v58 = vpop.f32.mrf.mxu2  ;;  %110 = vst.msk [vmem:[#allocation4] sm:$0xff] %vm109_vm5, %v2456_v41 }
 0x1a6   :  { %vm1523_vm3 = vcmp.gt.f32.partialorder %v1522_v54, 0.0  ;;  %v1524_v1 = vmul.f32 0.2, %v1522_v54  ;;  %v1528_v2 = vmul.f32 0.2, %v1526_v57  ;;  %v1409_v6 = vpop.f32.mrf.mxu3  ;;  %vm1527_vm4 = vcmp.gt.f32.partialorder %v1526_v57, 0.0 }
 0x1a7   :  { %v1472_v60 = vmul.f32 %v1471_v61, %v1443_v53 }
 0x1a8   :  { %v1525_v29 = vsel %vm1523_vm3, %v1522_v54, %v1524_v1  ;;  %v1529_v19 = vsel %vm1527_vm4, %v1526_v57, %v1528_v2 }
 0x1a9   :  { %v1530_v9 = vsub.f32 %v1525_v29, %v1517_v36 }
 0x1ab   :  { %v1531_v22 = vadd.f32 %v1530_v9, %v1529_v19 }
 0x1ac   :  { %v1503_v7 = vld [vmem:[#allocation4] sm:$0xff] }
 0x1ad   :  { %v1532_v27 = vsub.f32 %v1519_v26, %v1531_v22 }
 0x1af   :  { %1551 = vmatmul.f32.vlgmr.msra.gmra.mxu1 %v1532_v27  ;;  %v1533_v24 = vmul.f32 5000.0, %v1532_v27 }
 0x1b1   :  { %v1534_v44 = vmul.f32 %v1533_v24, %v1532_v27 }
 0x1b3   :  { %v1561_v37 = vmax.f32 %v1534_v44, 0.0 }
 0x1b6   :  { %v1465_v63 = vpop.f32.mrf.mxu0 }
 0x1b7   :  { %v1466_v15 = vadd.f32 %v2289_v18, %v1465_v63 }
 0x1b9   :  { %v1469_v47 = vmul.f32 %v1468_v5, %v1466_v15 }
 0x1bb   :  { %v1473_v48 = vadd.f32 %v1472_v60, %v1469_v47 }
 0x1bd   :  { %v1475_v59 = vmul.f32 %v2290_v10, %v1473_v48 }
 0x1bf   :  { %1476 = vadd.xlane.f32.xlu0 %v1475_v59 }
 0x22c   :  { %v1552_v23 = vpop.f32.mrf.mxu1 }
 0x22d   :  { %v1558_v50 = vmul.f32 %v1557_v56, %v1552_v23 }
 0x22f   :  { %v1559_v38 = vmul.f32 %v1558_v50, %v1552_v23 }
 0x231   :  { %v1564_v32 = vmax.f32 %v1559_v38, 0.0 }
 0x232   :  { %v1477_v39 = vpop.xlane.xlu0 %1476 }
 0x233   :  { %v1479_v31 = vadd.f32 %v1478_v40, %v1477_v39  ;;  %1583 = vmax.xlane.f32.xlu1 %v1564_v32 }
 0x235   :  { %v1480_v55 = vsub.f32 0.0, %v1479_v31 }
 0x237   :  { %v1482_v28 = vand.u32 2147483647, %v1480_v55  ;;  %v1481_v43 = vmax.f32 %v1480_v55, 0.0 }
 0x239   :  { %v1483_v62 = vsub.f32 0.0, %v1482_v28 }
 0x23b   :  { %v1484_v36 = vmul.f32 1.442695, %v1483_v62  ;;  %1597 = vmax.xlane.f32.xlu1 %v1561_v37 }
 0x23d   :  { %2291 = vpow2.f32 %v1484_v36 }
 0x243   :  { %v2292_v49 = vpop.eup %2291 }
 0x244   :  { %v1486_v51 = vadd.f32 1.0, %v2292_v49  ;;  %v1489_v26 = vmul.f32 -0.5, %v2292_v49  ;;  %v1492_v20 = vand.u32 2147483647, %v2292_v49 }
 0x246   :  { %2293 = vlog2.f32 %v1486_v51  ;;  %v1490_v14 = vadd.f32 1.0, %v1489_v26  ;;  %vm1493_vm6 = vcmp.lt.f32.partialorder %v1492_v20, 0.0004427343 }
 0x248   :  { %v1491_v35 = vmul.f32 %v2292_v49, %v1490_v14 }
 0x24c   :  { %v2294_v52 = vpop.eup %2293 }
 0x24d   :  { %v1488_v30 = vmul.f32 0.6931472, %v2294_v52 }
 0x24f   :  { %v1494_v3 = vsel %vm1493_vm6, %v1491_v35, %v1488_v30 }
 0x250   :  { %v1495_v11 = vadd.f32 %v1494_v3, %v1481_v43 }
 0x252   :  { %v1502_v8 = vsel %vm1501_vm7, %v1495_v11, 0.0 }
 0x253   :  { %v1504_v12 = vadd.f32 %v1503_v7, %v1502_v8 }
 0x255   :  { %1506 = vst.msk [vmem:[#allocation4] sm:$0xff] %vm109_vm5, %v1504_v12 }
 0x25c   :  { %v1569_v16 = vld [vmem:[#allocation4] sm:$0xff] }
 0x25d   :  { %v1570_v17 = vsel %vm109_vm5, %v1569_v16, 0.0 }
 0x25e   :  { %1571 = vadd.xlane.f32.xlu0 %v1570_v17 }
 0x2a6   :  { %v1584_v21 = vpop.xlane.xlu1 %1583 }
 0x2a7   :  { %v1585_v33 = vrot.slane %v1584_v21, 4 }
 0x2a9   :  { %v1586_v42 = vmax.f32 %v1584_v21, %v1585_v33 }
 0x2ab   :  { %v1587_v46 = vrot.slane %v1586_v42, 2 }
 0x2ad   :  { %v1588_v2 = vmax.f32 %v1586_v42, %v1587_v46 }
 0x2ae   :  { %v1598_v25 = vpop.xlane.xlu1 %1597 }
 0x2af   :  { %v1599_v34 = vrot.slane %v1598_v25, 4  ;;  %v1589_v19 = vrot.slane %v1588_v2, 1 }
 0x2b1   :  { %v1600_v45 = vmax.f32 %v1598_v25, %v1599_v34  ;;  %v1590_v18 = vmax.f32 %v1588_v2, %v1589_v19 }
 0x2b3   :  { %v1601_v57 = vrot.slane %v1600_v45, 2 }
 0x2b5   :  { %v1602_v6 = vmax.f32 %v1600_v45, %v1601_v57 }
 0x2b7   :  { %v1603_v27 = vrot.slane %v1602_v6, 1 }
 0x2b9   :  { %v1604_v53 = vmax.f32 %v1602_v6, %v1603_v27 }
 0x2d1   :  { %v1572_v54 = vpop.xlane.xlu0 %1571 }
 0x2d2   :  { %v1573_v58 = vrot.slane %v1572_v54, 4 }
 0x2d4   :  { %v1574_v1 = vadd.f32 %v1573_v58, %v1572_v54 }
 0x2d6   :  { %v1575_v29 = vrot.slane %v1574_v1, 2 }
 0x2d8   :  { %v1576_v9 = vadd.f32 %v1575_v29, %v1574_v1 }
 0x2da   :  { %v1577_v22 = vrot.slane %v1576_v9, 1 }
 0x2dc   :  { %v1578_v4 = vadd.f32 %v1577_v22, %v1576_v9 }
 0x2de   :  { %2270 = vpush %v1578_v4 }
 0x2df   :  { %2272 = vpush %v1590_v18 }
 0x2e0   :  { %2274 = vpush %v1604_v53 }
 0x30f   :  { %s2271_s1 = spop %2270 }
 0x310   :  { %s2273_s15 = spop %2272  ;;  %v1580_v63 = vstv %s2271_s1 }
 0x311   :  { %v1592_v61 = vstv %s2273_s15  ;;  %s2275_s3 = spop %2274  ;;  %v1581_v60 = vmul.f32 0.5, %v1580_v63 }
 0x312   :  { %v1593_v15 = vmul.f32 0.01, %v1592_v61  ;;  %v1606_v47 = vstv %s2275_s3 }
 0x313   :  { %v1607_v59 = vmul.f32 0.01, %v1606_v47 }
 0x314   :  { %v1594_v10 = vmul.f32 %v1593_v15, %v1468_v5 }
 0x316   :  { %v1595_v48 = vadd.f32 %v1594_v10, %v1581_v60 }
 0x318   :  { %v1608_v41 = vadd.f32 %v1607_v59, %v1595_v48 }
 0x31a   :  { %1610 = vst.msk [vmem:[#allocation18] sm:$0x1] %vm1609_vm8, %v1608_v41 }
 0x31b   :  { %1621 = dma.vmem_to_hbm [thread:$0]  %s1617_s19, 16, %s1619_s5, [#allocation11]  }
 0x31c   :  { %2445 = dma.done.wait [#allocation11], 16  }
 0x31d   :  { %2446 = vsyncadd [#allocation11], 4294967280 }
 0x31e   :  { %1626 = vsyncpa [#allocation10], 1 }
 0x31f   :  { %1627 = vsyncpa [#allocation13], 1 }
 0x320   :  { %1628 = vsyncpa [#allocation16], 1 }
 0x321   :  { %1629 = vsyncpa [#allocation11], 1 }

</bundles_post_ra>
